<compile_context>
chip_gen: v7x
topology: tpu7x:2x2x1
jax: 0.10.0
libtpu: 0.0.40
codegen_flags: <defaults>
</compile_context>

<pallas_src>
import functools
import math

import jax
import jax.numpy as jnp
from jax.experimental import pallas as pl
from jax.experimental.pallas import tpu as pltpu


def _mixed_mha_kernel(row_ref, col_ref, cost_ref,
                      wq_ref, wk_ref, wv_ref,
                      planes_ref, b2_ref,
                      o_ref, *, head_num, qkv_dim, ms_hidden_dim, col_cnt):
    """One grid step = one batch element; all heads fused in the body.

    row_ref:    (1, R, E)        VMEM
    col_ref:    (1, C, E)        VMEM
    cost_ref:   (1, R, H*C)      VMEM  cost matrix tiled per head along lanes
    wq/wk/wv:   (E, H*D)         VMEM  fused per-head projection weights
    planes_ref: (4, MS, R, H*C)  VMEM  pre-broadcast MLP params
                                       [0]=W1_score/sqrt(D), [1]=W1_cost,
                                       [2]=B1, [3]=W2
    b2_ref:     (R, H*C)         VMEM  pre-broadcast mix2 bias
    o_ref:      (1, R, H*D)      VMEM  output in final (B, R, H*D) layout
    """
    H, D, MS, C = head_num, qkv_dim, ms_hidden_dim, col_cnt

    x_row = row_ref[0]          # (R, E)
    x_col = col_ref[0]          # (C, E)
    cost_wide = cost_ref[0]     # (R, H*C)

    # Fused QKV projections: one MXU matmul per operand, all heads at once.
    q_all = jnp.dot(x_row, wq_ref[...], preferred_element_type=jnp.float32)  # (R, H*D)
    k_all = jnp.dot(x_col, wk_ref[...], preferred_element_type=jnp.float32)  # (C, H*D)
    v_all = jnp.dot(x_col, wv_ref[...], preferred_element_type=jnp.float32)  # (C, H*D)

    # Per-head dot-product scores, packed lane-dense into one (R, H*C) slab.
    # (Raw dot products; the 1/sqrt(D) scale is folded into planes_ref[0].)
    s_blocks = []
    for h in range(H):
        q_h = q_all[:, h * D:(h + 1) * D]       # (R, D)
        k_h = k_all[:, h * D:(h + 1) * D]       # (C, D)
        s_blocks.append(jax.lax.dot_general(
            q_h, k_h, (((1,), (1,)), ((), ())),
            preferred_element_type=jnp.float32))
    s_wide = jnp.concatenate(s_blocks, axis=-1)          # (R, H*C)

    # Mixed-score MLP (2 -> MS -> 1) on the head-stacked slab. Parameter
    # planes are already broadcast to (R, H*C): no scalar loads, no vsplats.
    acc = jnp.zeros_like(s_wide)
    for m in range(MS):
        w1s = planes_ref[0, m]                  # (R, H*C)
        w1c = planes_ref[1, m]
        b1 = planes_ref[2, m]
        w2 = planes_ref[3, m]
        hidden = jnp.maximum(s_wide * w1s + cost_wide * w1c + b1, 0.0)
        acc = acc + hidden * w2
    mixed = acc + b2_ref[...]                            # (R, H*C)

    # Per-head softmax over the C columns (exact reciprocal) and P @ V.
    outs = []
    for h in range(H):
        blk = mixed[:, h * C:(h + 1) * C]                # (R, C)
        m_max = jnp.max(blk, axis=-1, keepdims=True)
        e = jnp.exp(blk - m_max)
        denom = jnp.sum(e, axis=-1, keepdims=True)
        p = e / denom                                    # exact softmax
        v_h = v_all[:, h * D:(h + 1) * D]                # (C, D)
        outs.append(jnp.dot(p, v_h, preferred_element_type=jnp.float32))

    # Single lane-dense store of the full (R, H*D) result.
    o_ref[0] = jnp.concatenate(outs, axis=-1).astype(o_ref.dtype)


def mixed_score_mha(row_emb, col_emb, cost_mat, params, *,
                    head_num, qkv_dim, ms_hidden_dim):
    B, R, E = row_emb.shape
    C = col_emb.shape[1]
    H, D, MS = head_num, qkv_dim, ms_hidden_dim
    HD, HC = H * D, H * C

    # (H, E, D) per-head weights -> fused (E, H*D) slabs (column = h*D + d),
    # matching the torch Linear(E, H*D) '(h s)' head-major output split.
    wq_all = jnp.transpose(params["wq"], (1, 0, 2)).reshape(E, HD)
    wk_all = jnp.transpose(params["wk"], (1, 0, 2)).reshape(E, HD)
    wv_all = jnp.transpose(params["wv"], (1, 0, 2)).reshape(E, HD)

    # Pre-broadcast the tiny mixing parameters into lane-dense planes:
    # plane[m, r, h*C + c] = param[h, m]. Pure wrapper-side layout plumbing.
    def lane_plane(p_hm):                                # (H, MS) -> (MS, R, H*C)
        x = jnp.repeat(p_hm, C, axis=0).T                # (MS, H*C)
        return jnp.broadcast_to(x[:, None, :], (MS, R, HC))

    inv_sqrt_d = 1.0 / math.sqrt(D)
    w1s = params["mix1_w"][:, 0, :] * inv_sqrt_d         # fold 1/sqrt(D) into weight
    w1c = params["mix1_w"][:, 1, :]
    b1 = params["mix1_b"]                                # (H, MS)
    w2 = params["mix2_w"][:, :, 0]                       # (H, MS)
    b2 = params["mix2_b"][:, 0]                          # (H,)
    planes = jnp.stack([lane_plane(w1s), lane_plane(w1c),
                        lane_plane(b1), lane_plane(w2)], axis=0)  # (4, MS, R, H*C)
    b2_plane = jnp.broadcast_to(jnp.repeat(b2, C)[None, :], (R, HC))

    # Cost matrix tiled per head along lanes: (B, R, H*C).
    cost_wide = jnp.tile(cost_mat, (1, 1, H))

    kernel = functools.partial(_mixed_mha_kernel, head_num=H, qkv_dim=D,
                               ms_hidden_dim=MS, col_cnt=C)

    return pl.pallas_call(
        kernel,
        out_shape=jax.ShapeDtypeStruct((B, R, HD), jnp.float32),
        grid_spec=pltpu.PrefetchScalarGridSpec(
            num_scalar_prefetch=0,
            grid=(B,),
            in_specs=[
                pl.BlockSpec((1, R, E), lambda b: (b, 0, 0)),          # row_emb
                pl.BlockSpec((1, C, E), lambda b: (b, 0, 0)),          # col_emb
                pl.BlockSpec((1, R, HC), lambda b: (b, 0, 0)),         # cost (head-tiled)
                pl.BlockSpec((E, HD), lambda b: (0, 0)),               # Wq fused
                pl.BlockSpec((E, HD), lambda b: (0, 0)),               # Wk fused
                pl.BlockSpec((E, HD), lambda b: (0, 0)),               # Wv fused
                pl.BlockSpec((4, MS, R, HC), lambda b: (0, 0, 0, 0)),  # MLP planes
                pl.BlockSpec((R, HC), lambda b: (0, 0)),               # mix2 bias plane
            ],
            out_specs=pl.BlockSpec((1, R, HD), lambda b: (b, 0, 0)),
        ),
        compiler_params=pltpu.CompilerParams(
            dimension_semantics=("parallel",)),   # B across v7x's two TCs
    )(row_emb, col_emb, cost_wide, wq_all, wk_all, wv_all, planes, b2_plane)


def reference_mha(row_emb, col_emb, cost_mat, params, *, head_num, qkv_dim):
    """Plain-JAX reference mirroring the torch forward pass."""
    H, D = head_num, qkv_dim
    q = jnp.einsum('bre,hed->bhrd', row_emb, params["wq"])
    k = jnp.einsum('bce,hed->bhcd', col_emb, params["wk"])
    v = jnp.einsum('bce,hed->bhcd', col_emb, params["wv"])
    s = jnp.einsum('bhrd,bhcd->bhrc', q, k) / math.sqrt(D)
    cost = jnp.broadcast_to(cost_mat[:, None, :, :], s.shape)
    two = jnp.stack([s, cost], axis=-1)                                   # (B,H,R,C,2)
    ms1 = (jnp.einsum('bhrck,hkm->bhrcm', two, params["mix1_w"])
           + params["mix1_b"][None, :, None, None, :])                    # (B,H,R,C,MS)
    ms1 = jnp.maximum(ms1, 0.0)
    ms2 = (jnp.einsum('bhrcm,hm->bhrc', ms1, params["mix2_w"][:, :, 0])
           + params["mix2_b"][:, 0][None, :, None, None])                 # (B,H,R,C)
    w = jax.nn.softmax(ms2, axis=-1)
    out = jnp.einsum('bhrc,bhcd->bhrd', w, v)
    B, _, R, _ = out.shape
    return out.transpose(0, 2, 1, 3).reshape(B, R, H * D)


if __name__ == "__main__":
    B, R, C = 2, 8, 12            # batch, row_cnt, col_cnt
    E, H, D, MS = 32, 4, 8, 16    # embedding_dim, head_num, qkv_dim, ms_hidden_dim

    key = jax.random.PRNGKey(0)
    ks = jax.random.split(key, 10)

    row_emb = jax.random.normal(ks[0], (B, R, E), jnp.float32)
    col_emb = jax.random.normal(ks[1], (B, C, E), jnp.float32)
    cost_mat = jax.random.uniform(ks[2], (B, R, C), jnp.float32)

    lin_init = 1.0 / math.sqrt(E)
    mix1_init = (1.0 / 2.0) ** 0.5
    mix2_init = (1.0 / 16.0) ** 0.5
    params = {
        "wq": jax.random.uniform(ks[3], (H, E, D), jnp.float32, -lin_init, lin_init),
        "wk": jax.random.uniform(ks[4], (H, E, D), jnp.float32, -lin_init, lin_init),
        "wv": jax.random.uniform(ks[5], (H, E, D), jnp.float32, -lin_init, lin_init),
        "mix1_w": jax.random.uniform(ks[6], (H, 2, MS), jnp.float32, -mix1_init, mix1_init),
        "mix1_b": jax.random.uniform(ks[7], (H, MS), jnp.float32, -mix1_init, mix1_init),
        "mix2_w": jax.random.uniform(ks[8], (H, MS, 1), jnp.float32, -mix2_init, mix2_init),
        "mix2_b": jax.random.uniform(ks[9], (H, 1), jnp.float32, -mix2_init, mix2_init),
    }

    out = mixed_score_mha(row_emb, col_emb, cost_mat, params,
                          head_num=H, qkv_dim=D, ms_hidden_dim=MS)
    out = jax.block_until_ready(out)

    ref = reference_mha(row_emb, col_emb, cost_mat, params, head_num=H, qkv_dim=D)
    assert out.shape == (B, R, H * D), out.shape
    max_err = float(jnp.max(jnp.abs(out - ref)))
    if not jnp.allclose(out, ref, atol=5e-3, rtol=5e-3):
        raise AssertionError(
            f"Pallas kernel output does not match reference (max abs err {max_err})")

    print("KERNEL_OK")
</pallas_src>

<mosaic_0001>
module attributes {stable_mosaic.version = 11 : i64} {
  func.func @_mixed_mha_kernel(%arg0: i32, %arg1: memref<1x8x32xf32, #tpu.memory_space<vmem>>, %arg2: memref<1x12x32xf32, #tpu.memory_space<vmem>>, %arg3: memref<1x8x48xf32, #tpu.memory_space<vmem>>, %arg4: memref<32x32xf32, #tpu.memory_space<vmem>>, %arg5: memref<32x32xf32, #tpu.memory_space<vmem>>, %arg6: memref<32x32xf32, #tpu.memory_space<vmem>>, %arg7: memref<4x16x8x48xf32, #tpu.memory_space<vmem>>, %arg8: memref<8x48xf32, #tpu.memory_space<vmem>>, %arg9: memref<1x8x32xf32, #tpu.memory_space<vmem>>) attributes {dimension_semantics = [#tpu.dimension_semantics<parallel>], iteration_bounds = array<i64: 2>, scalar_prefetch = 0 : i64, scratch_operands = 0 : i64, tpu.core_type = #tpu.core_type<tc>, window_params = [{transform_indices = @transform_0, window_bounds = array<i64: 1, 8, 32>}, {transform_indices = @transform_1, window_bounds = array<i64: 1, 12, 32>}, {transform_indices = @transform_2, window_bounds = array<i64: 1, 8, 48>}, {pipeline_mode = #tpu.pipeline_mode<synchronous>, transform_indices = @transform_3, window_bounds = array<i64: 32, 32>}, {pipeline_mode = #tpu.pipeline_mode<synchronous>, transform_indices = @transform_4, window_bounds = array<i64: 32, 32>}, {pipeline_mode = #tpu.pipeline_mode<synchronous>, transform_indices = @transform_5, window_bounds = array<i64: 32, 32>}, {pipeline_mode = #tpu.pipeline_mode<synchronous>, transform_indices = @transform_6, window_bounds = array<i64: 4, 16, 8, 48>}, {pipeline_mode = #tpu.pipeline_mode<synchronous>, transform_indices = @transform_7, window_bounds = array<i64: 8, 48>}, {transform_indices = @transform_8, window_bounds = array<i64: 1, 8, 32>}]} {
    %c0 = arith.constant 0 : index
    %c0_0 = arith.constant 0 : index
    %c0_1 = arith.constant 0 : index
    %0 = vector.load %arg1[%c0, %c0_0, %c0_1] : memref<1x8x32xf32, #tpu.memory_space<vmem>>, vector<1x8x32xf32>
    %1 = vector.shape_cast %0 : vector<1x8x32xf32> to vector<8x32xf32>
    %c0_2 = arith.constant 0 : index
    %c0_3 = arith.constant 0 : index
    %c0_4 = arith.constant 0 : index
    %2 = vector.load %arg2[%c0_2, %c0_3, %c0_4] : memref<1x12x32xf32, #tpu.memory_space<vmem>>, vector<1x12x32xf32>
    %3 = vector.shape_cast %2 : vector<1x12x32xf32> to vector<12x32xf32>
    %c0_5 = arith.constant 0 : index
    %c0_6 = arith.constant 0 : index
    %c0_7 = arith.constant 0 : index
    %4 = vector.load %arg3[%c0_5, %c0_6, %c0_7] : memref<1x8x48xf32, #tpu.memory_space<vmem>>, vector<1x8x48xf32>
    %5 = vector.shape_cast %4 : vector<1x8x48xf32> to vector<8x48xf32>
    %c0_8 = arith.constant 0 : index
    %c0_9 = arith.constant 0 : index
    %6 = vector.load %arg4[%c0_8, %c0_9] : memref<32x32xf32, #tpu.memory_space<vmem>>, vector<32x32xf32>
    %cst = arith.constant dense<0.000000e+00> : vector<8x32xf32>
    %7 = tpu.matmul %1, %6, %cst {dimension_numbers = #tpu.dot_dimension_numbers<[1], [0], [0], [1], [0, 0, 1, 1], [], []>} : vector<8x32xf32>, vector<32x32xf32>, vector<8x32xf32> -> vector<8x32xf32>
    %c0_10 = arith.constant 0 : index
    %c0_11 = arith.constant 0 : index
    %8 = vector.load %arg5[%c0_10, %c0_11] : memref<32x32xf32, #tpu.memory_space<vmem>>, vector<32x32xf32>
    %cst_12 = arith.constant dense<0.000000e+00> : vector<12x32xf32>
    %9 = tpu.matmul %3, %8, %cst_12 {dimension_numbers = #tpu.dot_dimension_numbers<[1], [0], [0], [1], [0, 0, 1, 1], [], []>} : vector<12x32xf32>, vector<32x32xf32>, vector<12x32xf32> -> vector<12x32xf32>
    %c0_13 = arith.constant 0 : index
    %c0_14 = arith.constant 0 : index
    %10 = vector.load %arg6[%c0_13, %c0_14] : memref<32x32xf32, #tpu.memory_space<vmem>>, vector<32x32xf32>
    %cst_15 = arith.constant dense<0.000000e+00> : vector<12x32xf32>
    %11 = tpu.matmul %3, %10, %cst_15 {dimension_numbers = #tpu.dot_dimension_numbers<[1], [0], [0], [1], [0, 0, 1, 1], [], []>} : vector<12x32xf32>, vector<32x32xf32>, vector<12x32xf32> -> vector<12x32xf32>
    %12 = vector.extract_strided_slice %7 {offsets = [0, 0], sizes = [8, 8], strides = [1, 1]} : vector<8x32xf32> to vector<8x8xf32>
    %13 = vector.extract_strided_slice %9 {offsets = [0, 0], sizes = [12, 8], strides = [1, 1]} : vector<12x32xf32> to vector<12x8xf32>
    %cst_16 = arith.constant dense<0.000000e+00> : vector<8x12xf32>
    %14 = tpu.matmul %12, %13, %cst_16 {dimension_numbers = #tpu.dot_dimension_numbers<[1], [1], [0], [0], [0, 0, 1, 0], [], []>} : vector<8x8xf32>, vector<12x8xf32>, vector<8x12xf32> -> vector<8x12xf32>
    %15 = vector.extract_strided_slice %7 {offsets = [0, 8], sizes = [8, 8], strides = [1, 1]} : vector<8x32xf32> to vector<8x8xf32>
    %16 = vector.extract_strided_slice %9 {offsets = [0, 8], sizes = [12, 8], strides = [1, 1]} : vector<12x32xf32> to vector<12x8xf32>
    %cst_17 = arith.constant dense<0.000000e+00> : vector<8x12xf32>
    %17 = tpu.matmul %15, %16, %cst_17 {dimension_numbers = #tpu.dot_dimension_numbers<[1], [1], [0], [0], [0, 0, 1, 0], [], []>} : vector<8x8xf32>, vector<12x8xf32>, vector<8x12xf32> -> vector<8x12xf32>
    %18 = vector.extract_strided_slice %7 {offsets = [0, 16], sizes = [8, 8], strides = [1, 1]} : vector<8x32xf32> to vector<8x8xf32>
    %19 = vector.extract_strided_slice %9 {offsets = [0, 16], sizes = [12, 8], strides = [1, 1]} : vector<12x32xf32> to vector<12x8xf32>
    %cst_18 = arith.constant dense<0.000000e+00> : vector<8x12xf32>
    %20 = tpu.matmul %18, %19, %cst_18 {dimension_numbers = #tpu.dot_dimension_numbers<[1], [1], [0], [0], [0, 0, 1, 0], [], []>} : vector<8x8xf32>, vector<12x8xf32>, vector<8x12xf32> -> vector<8x12xf32>
    %21 = vector.extract_strided_slice %7 {offsets = [0, 24], sizes = [8, 8], strides = [1, 1]} : vector<8x32xf32> to vector<8x8xf32>
    %22 = vector.extract_strided_slice %9 {offsets = [0, 24], sizes = [12, 8], strides = [1, 1]} : vector<12x32xf32> to vector<12x8xf32>
    %cst_19 = arith.constant dense<0.000000e+00> : vector<8x12xf32>
    %23 = tpu.matmul %21, %22, %cst_19 {dimension_numbers = #tpu.dot_dimension_numbers<[1], [1], [0], [0], [0, 0, 1, 0], [], []>} : vector<8x8xf32>, vector<12x8xf32>, vector<8x12xf32> -> vector<8x12xf32>
    %24 = tpu.concatenate %14, %17, %20, %23 in 1 : vector<8x12xf32>, vector<8x12xf32>, vector<8x12xf32>, vector<8x12xf32> -> vector<8x48xf32>
    %cst_20 = arith.constant 0.000000e+00 : f32
    %25 = vector.broadcast %cst_20 : f32 to vector<8x48xf32>
    %c0_21 = arith.constant 0 : index
    %c0_22 = arith.constant 0 : index
    %c0_23 = arith.constant 0 : index
    %c0_24 = arith.constant 0 : index
    %26 = vector.load %arg7[%c0_21, %c0_22, %c0_23, %c0_24] : memref<4x16x8x48xf32, #tpu.memory_space<vmem>>, vector<1x1x8x48xf32>
    %27 = vector.shape_cast %26 : vector<1x1x8x48xf32> to vector<8x48xf32>
    %c1 = arith.constant 1 : index
    %c0_25 = arith.constant 0 : index
    %c0_26 = arith.constant 0 : index
    %c0_27 = arith.constant 0 : index
    %28 = vector.load %arg7[%c1, %c0_25, %c0_26, %c0_27] : memref<4x16x8x48xf32, #tpu.memory_space<vmem>>, vector<1x1x8x48xf32>
    %29 = vector.shape_cast %28 : vector<1x1x8x48xf32> to vector<8x48xf32>
    %c2 = arith.constant 2 : index
    %c0_28 = arith.constant 0 : index
    %c0_29 = arith.constant 0 : index
    %c0_30 = arith.constant 0 : index
    %30 = vector.load %arg7[%c2, %c0_28, %c0_29, %c0_30] : memref<4x16x8x48xf32, #tpu.memory_space<vmem>>, vector<1x1x8x48xf32>
    %31 = vector.shape_cast %30 : vector<1x1x8x48xf32> to vector<8x48xf32>
    %c3 = arith.constant 3 : index
    %c0_31 = arith.constant 0 : index
    %c0_32 = arith.constant 0 : index
    %c0_33 = arith.constant 0 : index
    %32 = vector.load %arg7[%c3, %c0_31, %c0_32, %c0_33] : memref<4x16x8x48xf32, #tpu.memory_space<vmem>>, vector<1x1x8x48xf32>
    %33 = vector.shape_cast %32 : vector<1x1x8x48xf32> to vector<8x48xf32>
    %34 = arith.mulf %24, %27 : vector<8x48xf32>
    %35 = arith.mulf %5, %29 : vector<8x48xf32>
    %36 = arith.addf %34, %35 : vector<8x48xf32>
    %37 = arith.addf %36, %31 : vector<8x48xf32>
    %cst_34 = arith.constant 0.000000e+00 : f32
    %38 = vector.broadcast %cst_34 : f32 to vector<8x48xf32>
    %39 = arith.maximumf %37, %38 : vector<8x48xf32>
    %40 = arith.mulf %39, %33 : vector<8x48xf32>
    %41 = arith.addf %25, %40 : vector<8x48xf32>
    %c0_35 = arith.constant 0 : index
    %c1_36 = arith.constant 1 : index
    %c0_37 = arith.constant 0 : index
    %c0_38 = arith.constant 0 : index
    %42 = vector.load %arg7[%c0_35, %c1_36, %c0_37, %c0_38] : memref<4x16x8x48xf32, #tpu.memory_space<vmem>>, vector<1x1x8x48xf32>
    %43 = vector.shape_cast %42 : vector<1x1x8x48xf32> to vector<8x48xf32>
    %c1_39 = arith.constant 1 : index
    %c1_40 = arith.constant 1 : index
    %c0_41 = arith.constant 0 : index
    %c0_42 = arith.constant 0 : index
    %44 = vector.load %arg7[%c1_39, %c1_40, %c0_41, %c0_42] : memref<4x16x8x48xf32, #tpu.memory_space<vmem>>, vector<1x1x8x48xf32>
    %45 = vector.shape_cast %44 : vector<1x1x8x48xf32> to vector<8x48xf32>
    %c2_43 = arith.constant 2 : index
    %c1_44 = arith.constant 1 : index
    %c0_45 = arith.constant 0 : index
    %c0_46 = arith.constant 0 : index
    %46 = vector.load %arg7[%c2_43, %c1_44, %c0_45, %c0_46] : memref<4x16x8x48xf32, #tpu.memory_space<vmem>>, vector<1x1x8x48xf32>
    %47 = vector.shape_cast %46 : vector<1x1x8x48xf32> to vector<8x48xf32>
    %c3_47 = arith.constant 3 : index
    %c1_48 = arith.constant 1 : index
    %c0_49 = arith.constant 0 : index
    %c0_50 = arith.constant 0 : index
    %48 = vector.load %arg7[%c3_47, %c1_48, %c0_49, %c0_50] : memref<4x16x8x48xf32, #tpu.memory_space<vmem>>, vector<1x1x8x48xf32>
    %49 = vector.shape_cast %48 : vector<1x1x8x48xf32> to vector<8x48xf32>
    %50 = arith.mulf %24, %43 : vector<8x48xf32>
    %51 = arith.mulf %5, %45 : vector<8x48xf32>
    %52 = arith.addf %50, %51 : vector<8x48xf32>
    %53 = arith.addf %52, %47 : vector<8x48xf32>
    %cst_51 = arith.constant 0.000000e+00 : f32
    %54 = vector.broadcast %cst_51 : f32 to vector<8x48xf32>
    %55 = arith.maximumf %53, %54 : vector<8x48xf32>
    %56 = arith.mulf %55, %49 : vector<8x48xf32>
    %57 = arith.addf %41, %56 : vector<8x48xf32>
    %c0_52 = arith.constant 0 : index
    %c2_53 = arith.constant 2 : index
    %c0_54 = arith.constant 0 : index
    %c0_55 = arith.constant 0 : index
    %58 = vector.load %arg7[%c0_52, %c2_53, %c0_54, %c0_55] : memref<4x16x8x48xf32, #tpu.memory_space<vmem>>, vector<1x1x8x48xf32>
    %59 = vector.shape_cast %58 : vector<1x1x8x48xf32> to vector<8x48xf32>
    %c1_56 = arith.constant 1 : index
    %c2_57 = arith.constant 2 : index
    %c0_58 = arith.constant 0 : index
    %c0_59 = arith.constant 0 : index
    %60 = vector.load %arg7[%c1_56, %c2_57, %c0_58, %c0_59] : memref<4x16x8x48xf32, #tpu.memory_space<vmem>>, vector<1x1x8x48xf32>
    %61 = vector.shape_cast %60 : vector<1x1x8x48xf32> to vector<8x48xf32>
    %c2_60 = arith.constant 2 : index
    %c2_61 = arith.constant 2 : index
    %c0_62 = arith.constant 0 : index
    %c0_63 = arith.constant 0 : index
    %62 = vector.load %arg7[%c2_60, %c2_61, %c0_62, %c0_63] : memref<4x16x8x48xf32, #tpu.memory_space<vmem>>, vector<1x1x8x48xf32>
    %63 = vector.shape_cast %62 : vector<1x1x8x48xf32> to vector<8x48xf32>
    %c3_64 = arith.constant 3 : index
    %c2_65 = arith.constant 2 : index
    %c0_66 = arith.constant 0 : index
    %c0_67 = arith.constant 0 : index
    %64 = vector.load %arg7[%c3_64, %c2_65, %c0_66, %c0_67] : memref<4x16x8x48xf32, #tpu.memory_space<vmem>>, vector<1x1x8x48xf32>
    %65 = vector.shape_cast %64 : vector<1x1x8x48xf32> to vector<8x48xf32>
    %66 = arith.mulf %24, %59 : vector<8x48xf32>
    %67 = arith.mulf %5, %61 : vector<8x48xf32>
    %68 = arith.addf %66, %67 : vector<8x48xf32>
    %69 = arith.addf %68, %63 : vector<8x48xf32>
    %cst_68 = arith.constant 0.000000e+00 : f32
    %70 = vector.broadcast %cst_68 : f32 to vector<8x48xf32>
    %71 = arith.maximumf %69, %70 : vector<8x48xf32>
    %72 = arith.mulf %71, %65 : vector<8x48xf32>
    %73 = arith.addf %57, %72 : vector<8x48xf32>
    %c0_69 = arith.constant 0 : index
    %c3_70 = arith.constant 3 : index
    %c0_71 = arith.constant 0 : index
    %c0_72 = arith.constant 0 : index
    %74 = vector.load %arg7[%c0_69, %c3_70, %c0_71, %c0_72] : memref<4x16x8x48xf32, #tpu.memory_space<vmem>>, vector<1x1x8x48xf32>
    %75 = vector.shape_cast %74 : vector<1x1x8x48xf32> to vector<8x48xf32>
    %c1_73 = arith.constant 1 : index
    %c3_74 = arith.constant 3 : index
    %c0_75 = arith.constant 0 : index
    %c0_76 = arith.constant 0 : index
    %76 = vector.load %arg7[%c1_73, %c3_74, %c0_75, %c0_76] : memref<4x16x8x48xf32, #tpu.memory_space<vmem>>, vector<1x1x8x48xf32>
    %77 = vector.shape_cast %76 : vector<1x1x8x48xf32> to vector<8x48xf32>
    %c2_77 = arith.constant 2 : index
    %c3_78 = arith.constant 3 : index
    %c0_79 = arith.constant 0 : index
    %c0_80 = arith.constant 0 : index
    %78 = vector.load %arg7[%c2_77, %c3_78, %c0_79, %c0_80] : memref<4x16x8x48xf32, #tpu.memory_space<vmem>>, vector<1x1x8x48xf32>
    %79 = vector.shape_cast %78 : vector<1x1x8x48xf32> to vector<8x48xf32>
    %c3_81 = arith.constant 3 : index
    %c3_82 = arith.constant 3 : index
    %c0_83 = arith.constant 0 : index
    %c0_84 = arith.constant 0 : index
    %80 = vector.load %arg7[%c3_81, %c3_82, %c0_83, %c0_84] : memref<4x16x8x48xf32, #tpu.memory_space<vmem>>, vector<1x1x8x48xf32>
    %81 = vector.shape_cast %80 : vector<1x1x8x48xf32> to vector<8x48xf32>
    %82 = arith.mulf %24, %75 : vector<8x48xf32>
    %83 = arith.mulf %5, %77 : vector<8x48xf32>
    %84 = arith.addf %82, %83 : vector<8x48xf32>
    %85 = arith.addf %84, %79 : vector<8x48xf32>
    %cst_85 = arith.constant 0.000000e+00 : f32
    %86 = vector.broadcast %cst_85 : f32 to vector<8x48xf32>
    %87 = arith.maximumf %85, %86 : vector<8x48xf32>
    %88 = arith.mulf %87, %81 : vector<8x48xf32>
    %89 = arith.addf %73, %88 : vector<8x48xf32>
    %c0_86 = arith.constant 0 : index
    %c4 = arith.constant 4 : index
    %c0_87 = arith.constant 0 : index
    %c0_88 = arith.constant 0 : index
    %90 = vector.load %arg7[%c0_86, %c4, %c0_87, %c0_88] : memref<4x16x8x48xf32, #tpu.memory_space<vmem>>, vector<1x1x8x48xf32>
    %91 = vector.shape_cast %90 : vector<1x1x8x48xf32> to vector<8x48xf32>
    %c1_89 = arith.constant 1 : index
    %c4_90 = arith.constant 4 : index
    %c0_91 = arith.constant 0 : index
    %c0_92 = arith.constant 0 : index
    %92 = vector.load %arg7[%c1_89, %c4_90, %c0_91, %c0_92] : memref<4x16x8x48xf32, #tpu.memory_space<vmem>>, vector<1x1x8x48xf32>
    %93 = vector.shape_cast %92 : vector<1x1x8x48xf32> to vector<8x48xf32>
    %c2_93 = arith.constant 2 : index
    %c4_94 = arith.constant 4 : index
    %c0_95 = arith.constant 0 : index
    %c0_96 = arith.constant 0 : index
    %94 = vector.load %arg7[%c2_93, %c4_94, %c0_95, %c0_96] : memref<4x16x8x48xf32, #tpu.memory_space<vmem>>, vector<1x1x8x48xf32>
    %95 = vector.shape_cast %94 : vector<1x1x8x48xf32> to vector<8x48xf32>
    %c3_97 = arith.constant 3 : index
    %c4_98 = arith.constant 4 : index
    %c0_99 = arith.constant 0 : index
    %c0_100 = arith.constant 0 : index
    %96 = vector.load %arg7[%c3_97, %c4_98, %c0_99, %c0_100] : memref<4x16x8x48xf32, #tpu.memory_space<vmem>>, vector<1x1x8x48xf32>
    %97 = vector.shape_cast %96 : vector<1x1x8x48xf32> to vector<8x48xf32>
    %98 = arith.mulf %24, %91 : vector<8x48xf32>
    %99 = arith.mulf %5, %93 : vector<8x48xf32>
    %100 = arith.addf %98, %99 : vector<8x48xf32>
    %101 = arith.addf %100, %95 : vector<8x48xf32>
    %cst_101 = arith.constant 0.000000e+00 : f32
    %102 = vector.broadcast %cst_101 : f32 to vector<8x48xf32>
    %103 = arith.maximumf %101, %102 : vector<8x48xf32>
    %104 = arith.mulf %103, %97 : vector<8x48xf32>
    %105 = arith.addf %89, %104 : vector<8x48xf32>
    %c0_102 = arith.constant 0 : index
    %c5 = arith.constant 5 : index
    %c0_103 = arith.constant 0 : index
    %c0_104 = arith.constant 0 : index
    %106 = vector.load %arg7[%c0_102, %c5, %c0_103, %c0_104] : memref<4x16x8x48xf32, #tpu.memory_space<vmem>>, vector<1x1x8x48xf32>
    %107 = vector.shape_cast %106 : vector<1x1x8x48xf32> to vector<8x48xf32>
    %c1_105 = arith.constant 1 : index
    %c5_106 = arith.constant 5 : index
    %c0_107 = arith.constant 0 : index
    %c0_108 = arith.constant 0 : index
    %108 = vector.load %arg7[%c1_105, %c5_106, %c0_107, %c0_108] : memref<4x16x8x48xf32, #tpu.memory_space<vmem>>, vector<1x1x8x48xf32>
    %109 = vector.shape_cast %108 : vector<1x1x8x48xf32> to vector<8x48xf32>
    %c2_109 = arith.constant 2 : index
    %c5_110 = arith.constant 5 : index
    %c0_111 = arith.constant 0 : index
    %c0_112 = arith.constant 0 : index
    %110 = vector.load %arg7[%c2_109, %c5_110, %c0_111, %c0_112] : memref<4x16x8x48xf32, #tpu.memory_space<vmem>>, vector<1x1x8x48xf32>
    %111 = vector.shape_cast %110 : vector<1x1x8x48xf32> to vector<8x48xf32>
    %c3_113 = arith.constant 3 : index
    %c5_114 = arith.constant 5 : index
    %c0_115 = arith.constant 0 : index
    %c0_116 = arith.constant 0 : index
    %112 = vector.load %arg7[%c3_113, %c5_114, %c0_115, %c0_116] : memref<4x16x8x48xf32, #tpu.memory_space<vmem>>, vector<1x1x8x48xf32>
    %113 = vector.shape_cast %112 : vector<1x1x8x48xf32> to vector<8x48xf32>
    %114 = arith.mulf %24, %107 : vector<8x48xf32>
    %115 = arith.mulf %5, %109 : vector<8x48xf32>
    %116 = arith.addf %114, %115 : vector<8x48xf32>
    %117 = arith.addf %116, %111 : vector<8x48xf32>
    %cst_117 = arith.constant 0.000000e+00 : f32
    %118 = vector.broadcast %cst_117 : f32 to vector<8x48xf32>
    %119 = arith.maximumf %117, %118 : vector<8x48xf32>
    %120 = arith.mulf %119, %113 : vector<8x48xf32>
    %121 = arith.addf %105, %120 : vector<8x48xf32>
    %c0_118 = arith.constant 0 : index
    %c6 = arith.constant 6 : index
    %c0_119 = arith.constant 0 : index
    %c0_120 = arith.constant 0 : index
    %122 = vector.load %arg7[%c0_118, %c6, %c0_119, %c0_120] : memref<4x16x8x48xf32, #tpu.memory_space<vmem>>, vector<1x1x8x48xf32>
    %123 = vector.shape_cast %122 : vector<1x1x8x48xf32> to vector<8x48xf32>
    %c1_121 = arith.constant 1 : index
    %c6_122 = arith.constant 6 : index
    %c0_123 = arith.constant 0 : index
    %c0_124 = arith.constant 0 : index
    %124 = vector.load %arg7[%c1_121, %c6_122, %c0_123, %c0_124] : memref<4x16x8x48xf32, #tpu.memory_space<vmem>>, vector<1x1x8x48xf32>
    %125 = vector.shape_cast %124 : vector<1x1x8x48xf32> to vector<8x48xf32>
    %c2_125 = arith.constant 2 : index
    %c6_126 = arith.constant 6 : index
    %c0_127 = arith.constant 0 : index
    %c0_128 = arith.constant 0 : index
    %126 = vector.load %arg7[%c2_125, %c6_126, %c0_127, %c0_128] : memref<4x16x8x48xf32, #tpu.memory_space<vmem>>, vector<1x1x8x48xf32>
    %127 = vector.shape_cast %126 : vector<1x1x8x48xf32> to vector<8x48xf32>
    %c3_129 = arith.constant 3 : index
    %c6_130 = arith.constant 6 : index
    %c0_131 = arith.constant 0 : index
    %c0_132 = arith.constant 0 : index
    %128 = vector.load %arg7[%c3_129, %c6_130, %c0_131, %c0_132] : memref<4x16x8x48xf32, #tpu.memory_space<vmem>>, vector<1x1x8x48xf32>
    %129 = vector.shape_cast %128 : vector<1x1x8x48xf32> to vector<8x48xf32>
    %130 = arith.mulf %24, %123 : vector<8x48xf32>
    %131 = arith.mulf %5, %125 : vector<8x48xf32>
    %132 = arith.addf %130, %131 : vector<8x48xf32>
    %133 = arith.addf %132, %127 : vector<8x48xf32>
    %cst_133 = arith.constant 0.000000e+00 : f32
    %134 = vector.broadcast %cst_133 : f32 to vector<8x48xf32>
    %135 = arith.maximumf %133, %134 : vector<8x48xf32>
    %136 = arith.mulf %135, %129 : vector<8x48xf32>
    %137 = arith.addf %121, %136 : vector<8x48xf32>
    %c0_134 = arith.constant 0 : index
    %c7 = arith.constant 7 : index
    %c0_135 = arith.constant 0 : index
    %c0_136 = arith.constant 0 : index
    %138 = vector.load %arg7[%c0_134, %c7, %c0_135, %c0_136] : memref<4x16x8x48xf32, #tpu.memory_space<vmem>>, vector<1x1x8x48xf32>
    %139 = vector.shape_cast %138 : vector<1x1x8x48xf32> to vector<8x48xf32>
    %c1_137 = arith.constant 1 : index
    %c7_138 = arith.constant 7 : index
    %c0_139 = arith.constant 0 : index
    %c0_140 = arith.constant 0 : index
    %140 = vector.load %arg7[%c1_137, %c7_138, %c0_139, %c0_140] : memref<4x16x8x48xf32, #tpu.memory_space<vmem>>, vector<1x1x8x48xf32>
    %141 = vector.shape_cast %140 : vector<1x1x8x48xf32> to vector<8x48xf32>
    %c2_141 = arith.constant 2 : index
    %c7_142 = arith.constant 7 : index
    %c0_143 = arith.constant 0 : index
    %c0_144 = arith.constant 0 : index
    %142 = vector.load %arg7[%c2_141, %c7_142, %c0_143, %c0_144] : memref<4x16x8x48xf32, #tpu.memory_space<vmem>>, vector<1x1x8x48xf32>
    %143 = vector.shape_cast %142 : vector<1x1x8x48xf32> to vector<8x48xf32>
    %c3_145 = arith.constant 3 : index
    %c7_146 = arith.constant 7 : index
    %c0_147 = arith.constant 0 : index
    %c0_148 = arith.constant 0 : index
    %144 = vector.load %arg7[%c3_145, %c7_146, %c0_147, %c0_148] : memref<4x16x8x48xf32, #tpu.memory_space<vmem>>, vector<1x1x8x48xf32>
    %145 = vector.shape_cast %144 : vector<1x1x8x48xf32> to vector<8x48xf32>
    %146 = arith.mulf %24, %139 : vector<8x48xf32>
    %147 = arith.mulf %5, %141 : vector<8x48xf32>
    %148 = arith.addf %146, %147 : vector<8x48xf32>
    %149 = arith.addf %148, %143 : vector<8x48xf32>
    %cst_149 = arith.constant 0.000000e+00 : f32
    %150 = vector.broadcast %cst_149 : f32 to vector<8x48xf32>
    %151 = arith.maximumf %149, %150 : vector<8x48xf32>
    %152 = arith.mulf %151, %145 : vector<8x48xf32>
    %153 = arith.addf %137, %152 : vector<8x48xf32>
    %c0_150 = arith.constant 0 : index
    %c8 = arith.constant 8 : index
    %c0_151 = arith.constant 0 : index
    %c0_152 = arith.constant 0 : index
    %154 = vector.load %arg7[%c0_150, %c8, %c0_151, %c0_152] : memref<4x16x8x48xf32, #tpu.memory_space<vmem>>, vector<1x1x8x48xf32>
    %155 = vector.shape_cast %154 : vector<1x1x8x48xf32> to vector<8x48xf32>
    %c1_153 = arith.constant 1 : index
    %c8_154 = arith.constant 8 : index
    %c0_155 = arith.constant 0 : index
    %c0_156 = arith.constant 0 : index
    %156 = vector.load %arg7[%c1_153, %c8_154, %c0_155, %c0_156] : memref<4x16x8x48xf32, #tpu.memory_space<vmem>>, vector<1x1x8x48xf32>
    %157 = vector.shape_cast %156 : vector<1x1x8x48xf32> to vector<8x48xf32>
    %c2_157 = arith.constant 2 : index
    %c8_158 = arith.constant 8 : index
    %c0_159 = arith.constant 0 : index
    %c0_160 = arith.constant 0 : index
    %158 = vector.load %arg7[%c2_157, %c8_158, %c0_159, %c0_160] : memref<4x16x8x48xf32, #tpu.memory_space<vmem>>, vector<1x1x8x48xf32>
    %159 = vector.shape_cast %158 : vector<1x1x8x48xf32> to vector<8x48xf32>
    %c3_161 = arith.constant 3 : index
    %c8_162 = arith.constant 8 : index
    %c0_163 = arith.constant 0 : index
    %c0_164 = arith.constant 0 : index
    %160 = vector.load %arg7[%c3_161, %c8_162, %c0_163, %c0_164] : memref<4x16x8x48xf32, #tpu.memory_space<vmem>>, vector<1x1x8x48xf32>
    %161 = vector.shape_cast %160 : vector<1x1x8x48xf32> to vector<8x48xf32>
    %162 = arith.mulf %24, %155 : vector<8x48xf32>
    %163 = arith.mulf %5, %157 : vector<8x48xf32>
    %164 = arith.addf %162, %163 : vector<8x48xf32>
    %165 = arith.addf %164, %159 : vector<8x48xf32>
    %cst_165 = arith.constant 0.000000e+00 : f32
    %166 = vector.broadcast %cst_165 : f32 to vector<8x48xf32>
    %167 = arith.maximumf %165, %166 : vector<8x48xf32>
    %168 = arith.mulf %167, %161 : vector<8x48xf32>
    %169 = arith.addf %153, %168 : vector<8x48xf32>
    %c0_166 = arith.constant 0 : index
    %c9 = arith.constant 9 : index
    %c0_167 = arith.constant 0 : index
    %c0_168 = arith.constant 0 : index
    %170 = vector.load %arg7[%c0_166, %c9, %c0_167, %c0_168] : memref<4x16x8x48xf32, #tpu.memory_space<vmem>>, vector<1x1x8x48xf32>
    %171 = vector.shape_cast %170 : vector<1x1x8x48xf32> to vector<8x48xf32>
    %c1_169 = arith.constant 1 : index
    %c9_170 = arith.constant 9 : index
    %c0_171 = arith.constant 0 : index
    %c0_172 = arith.constant 0 : index
    %172 = vector.load %arg7[%c1_169, %c9_170, %c0_171, %c0_172] : memref<4x16x8x48xf32, #tpu.memory_space<vmem>>, vector<1x1x8x48xf32>
    %173 = vector.shape_cast %172 : vector<1x1x8x48xf32> to vector<8x48xf32>
    %c2_173 = arith.constant 2 : index
    %c9_174 = arith.constant 9 : index
    %c0_175 = arith.constant 0 : index
    %c0_176 = arith.constant 0 : index
    %174 = vector.load %arg7[%c2_173, %c9_174, %c0_175, %c0_176] : memref<4x16x8x48xf32, #tpu.memory_space<vmem>>, vector<1x1x8x48xf32>
    %175 = vector.shape_cast %174 : vector<1x1x8x48xf32> to vector<8x48xf32>
    %c3_177 = arith.constant 3 : index
    %c9_178 = arith.constant 9 : index
    %c0_179 = arith.constant 0 : index
    %c0_180 = arith.constant 0 : index
    %176 = vector.load %arg7[%c3_177, %c9_178, %c0_179, %c0_180] : memref<4x16x8x48xf32, #tpu.memory_space<vmem>>, vector<1x1x8x48xf32>
    %177 = vector.shape_cast %176 : vector<1x1x8x48xf32> to vector<8x48xf32>
    %178 = arith.mulf %24, %171 : vector<8x48xf32>
    %179 = arith.mulf %5, %173 : vector<8x48xf32>
    %180 = arith.addf %178, %179 : vector<8x48xf32>
    %181 = arith.addf %180, %175 : vector<8x48xf32>
    %cst_181 = arith.constant 0.000000e+00 : f32
    %182 = vector.broadcast %cst_181 : f32 to vector<8x48xf32>
    %183 = arith.maximumf %181, %182 : vector<8x48xf32>
    %184 = arith.mulf %183, %177 : vector<8x48xf32>
    %185 = arith.addf %169, %184 : vector<8x48xf32>
    %c0_182 = arith.constant 0 : index
    %c10 = arith.constant 10 : index
    %c0_183 = arith.constant 0 : index
    %c0_184 = arith.constant 0 : index
    %186 = vector.load %arg7[%c0_182, %c10, %c0_183, %c0_184] : memref<4x16x8x48xf32, #tpu.memory_space<vmem>>, vector<1x1x8x48xf32>
    %187 = vector.shape_cast %186 : vector<1x1x8x48xf32> to vector<8x48xf32>
    %c1_185 = arith.constant 1 : index
    %c10_186 = arith.constant 10 : index
    %c0_187 = arith.constant 0 : index
    %c0_188 = arith.constant 0 : index
    %188 = vector.load %arg7[%c1_185, %c10_186, %c0_187, %c0_188] : memref<4x16x8x48xf32, #tpu.memory_space<vmem>>, vector<1x1x8x48xf32>
    %189 = vector.shape_cast %188 : vector<1x1x8x48xf32> to vector<8x48xf32>
    %c2_189 = arith.constant 2 : index
    %c10_190 = arith.constant 10 : index
    %c0_191 = arith.constant 0 : index
    %c0_192 = arith.constant 0 : index
    %190 = vector.load %arg7[%c2_189, %c10_190, %c0_191, %c0_192] : memref<4x16x8x48xf32, #tpu.memory_space<vmem>>, vector<1x1x8x48xf32>
    %191 = vector.shape_cast %190 : vector<1x1x8x48xf32> to vector<8x48xf32>
    %c3_193 = arith.constant 3 : index
    %c10_194 = arith.constant 10 : index
    %c0_195 = arith.constant 0 : index
    %c0_196 = arith.constant 0 : index
    %192 = vector.load %arg7[%c3_193, %c10_194, %c0_195, %c0_196] : memref<4x16x8x48xf32, #tpu.memory_space<vmem>>, vector<1x1x8x48xf32>
    %193 = vector.shape_cast %192 : vector<1x1x8x48xf32> to vector<8x48xf32>
    %194 = arith.mulf %24, %187 : vector<8x48xf32>
    %195 = arith.mulf %5, %189 : vector<8x48xf32>
    %196 = arith.addf %194, %195 : vector<8x48xf32>
    %197 = arith.addf %196, %191 : vector<8x48xf32>
    %cst_197 = arith.constant 0.000000e+00 : f32
    %198 = vector.broadcast %cst_197 : f32 to vector<8x48xf32>
    %199 = arith.maximumf %197, %198 : vector<8x48xf32>
    %200 = arith.mulf %199, %193 : vector<8x48xf32>
    %201 = arith.addf %185, %200 : vector<8x48xf32>
    %c0_198 = arith.constant 0 : index
    %c11 = arith.constant 11 : index
    %c0_199 = arith.constant 0 : index
    %c0_200 = arith.constant 0 : index
    %202 = vector.load %arg7[%c0_198, %c11, %c0_199, %c0_200] : memref<4x16x8x48xf32, #tpu.memory_space<vmem>>, vector<1x1x8x48xf32>
    %203 = vector.shape_cast %202 : vector<1x1x8x48xf32> to vector<8x48xf32>
    %c1_201 = arith.constant 1 : index
    %c11_202 = arith.constant 11 : index
    %c0_203 = arith.constant 0 : index
    %c0_204 = arith.constant 0 : index
    %204 = vector.load %arg7[%c1_201, %c11_202, %c0_203, %c0_204] : memref<4x16x8x48xf32, #tpu.memory_space<vmem>>, vector<1x1x8x48xf32>
    %205 = vector.shape_cast %204 : vector<1x1x8x48xf32> to vector<8x48xf32>
    %c2_205 = arith.constant 2 : index
    %c11_206 = arith.constant 11 : index
    %c0_207 = arith.constant 0 : index
    %c0_208 = arith.constant 0 : index
    %206 = vector.load %arg7[%c2_205, %c11_206, %c0_207, %c0_208] : memref<4x16x8x48xf32, #tpu.memory_space<vmem>>, vector<1x1x8x48xf32>
    %207 = vector.shape_cast %206 : vector<1x1x8x48xf32> to vector<8x48xf32>
    %c3_209 = arith.constant 3 : index
    %c11_210 = arith.constant 11 : index
    %c0_211 = arith.constant 0 : index
    %c0_212 = arith.constant 0 : index
    %208 = vector.load %arg7[%c3_209, %c11_210, %c0_211, %c0_212] : memref<4x16x8x48xf32, #tpu.memory_space<vmem>>, vector<1x1x8x48xf32>
    %209 = vector.shape_cast %208 : vector<1x1x8x48xf32> to vector<8x48xf32>
    %210 = arith.mulf %24, %203 : vector<8x48xf32>
    %211 = arith.mulf %5, %205 : vector<8x48xf32>
    %212 = arith.addf %210, %211 : vector<8x48xf32>
    %213 = arith.addf %212, %207 : vector<8x48xf32>
    %cst_213 = arith.constant 0.000000e+00 : f32
    %214 = vector.broadcast %cst_213 : f32 to vector<8x48xf32>
    %215 = arith.maximumf %213, %214 : vector<8x48xf32>
    %216 = arith.mulf %215, %209 : vector<8x48xf32>
    %217 = arith.addf %201, %216 : vector<8x48xf32>
    %c0_214 = arith.constant 0 : index
    %c12 = arith.constant 12 : index
    %c0_215 = arith.constant 0 : index
    %c0_216 = arith.constant 0 : index
    %218 = vector.load %arg7[%c0_214, %c12, %c0_215, %c0_216] : memref<4x16x8x48xf32, #tpu.memory_space<vmem>>, vector<1x1x8x48xf32>
    %219 = vector.shape_cast %218 : vector<1x1x8x48xf32> to vector<8x48xf32>
    %c1_217 = arith.constant 1 : index
    %c12_218 = arith.constant 12 : index
    %c0_219 = arith.constant 0 : index
    %c0_220 = arith.constant 0 : index
    %220 = vector.load %arg7[%c1_217, %c12_218, %c0_219, %c0_220] : memref<4x16x8x48xf32, #tpu.memory_space<vmem>>, vector<1x1x8x48xf32>
    %221 = vector.shape_cast %220 : vector<1x1x8x48xf32> to vector<8x48xf32>
    %c2_221 = arith.constant 2 : index
    %c12_222 = arith.constant 12 : index
    %c0_223 = arith.constant 0 : index
    %c0_224 = arith.constant 0 : index
    %222 = vector.load %arg7[%c2_221, %c12_222, %c0_223, %c0_224] : memref<4x16x8x48xf32, #tpu.memory_space<vmem>>, vector<1x1x8x48xf32>
    %223 = vector.shape_cast %222 : vector<1x1x8x48xf32> to vector<8x48xf32>
    %c3_225 = arith.constant 3 : index
    %c12_226 = arith.constant 12 : index
    %c0_227 = arith.constant 0 : index
    %c0_228 = arith.constant 0 : index
    %224 = vector.load %arg7[%c3_225, %c12_226, %c0_227, %c0_228] : memref<4x16x8x48xf32, #tpu.memory_space<vmem>>, vector<1x1x8x48xf32>
    %225 = vector.shape_cast %224 : vector<1x1x8x48xf32> to vector<8x48xf32>
    %226 = arith.mulf %24, %219 : vector<8x48xf32>
    %227 = arith.mulf %5, %221 : vector<8x48xf32>
    %228 = arith.addf %226, %227 : vector<8x48xf32>
    %229 = arith.addf %228, %223 : vector<8x48xf32>
    %cst_229 = arith.constant 0.000000e+00 : f32
    %230 = vector.broadcast %cst_229 : f32 to vector<8x48xf32>
    %231 = arith.maximumf %229, %230 : vector<8x48xf32>
    %232 = arith.mulf %231, %225 : vector<8x48xf32>
    %233 = arith.addf %217, %232 : vector<8x48xf32>
    %c0_230 = arith.constant 0 : index
    %c13 = arith.constant 13 : index
    %c0_231 = arith.constant 0 : index
    %c0_232 = arith.constant 0 : index
    %234 = vector.load %arg7[%c0_230, %c13, %c0_231, %c0_232] : memref<4x16x8x48xf32, #tpu.memory_space<vmem>>, vector<1x1x8x48xf32>
    %235 = vector.shape_cast %234 : vector<1x1x8x48xf32> to vector<8x48xf32>
    %c1_233 = arith.constant 1 : index
    %c13_234 = arith.constant 13 : index
    %c0_235 = arith.constant 0 : index
    %c0_236 = arith.constant 0 : index
    %236 = vector.load %arg7[%c1_233, %c13_234, %c0_235, %c0_236] : memref<4x16x8x48xf32, #tpu.memory_space<vmem>>, vector<1x1x8x48xf32>
    %237 = vector.shape_cast %236 : vector<1x1x8x48xf32> to vector<8x48xf32>
    %c2_237 = arith.constant 2 : index
    %c13_238 = arith.constant 13 : index
    %c0_239 = arith.constant 0 : index
    %c0_240 = arith.constant 0 : index
    %238 = vector.load %arg7[%c2_237, %c13_238, %c0_239, %c0_240] : memref<4x16x8x48xf32, #tpu.memory_space<vmem>>, vector<1x1x8x48xf32>
    %239 = vector.shape_cast %238 : vector<1x1x8x48xf32> to vector<8x48xf32>
    %c3_241 = arith.constant 3 : index
    %c13_242 = arith.constant 13 : index
    %c0_243 = arith.constant 0 : index
    %c0_244 = arith.constant 0 : index
    %240 = vector.load %arg7[%c3_241, %c13_242, %c0_243, %c0_244] : memref<4x16x8x48xf32, #tpu.memory_space<vmem>>, vector<1x1x8x48xf32>
    %241 = vector.shape_cast %240 : vector<1x1x8x48xf32> to vector<8x48xf32>
    %242 = arith.mulf %24, %235 : vector<8x48xf32>
    %243 = arith.mulf %5, %237 : vector<8x48xf32>
    %244 = arith.addf %242, %243 : vector<8x48xf32>
    %245 = arith.addf %244, %239 : vector<8x48xf32>
    %cst_245 = arith.constant 0.000000e+00 : f32
    %246 = vector.broadcast %cst_245 : f32 to vector<8x48xf32>
    %247 = arith.maximumf %245, %246 : vector<8x48xf32>
    %248 = arith.mulf %247, %241 : vector<8x48xf32>
    %249 = arith.addf %233, %248 : vector<8x48xf32>
    %c0_246 = arith.constant 0 : index
    %c14 = arith.constant 14 : index
    %c0_247 = arith.constant 0 : index
    %c0_248 = arith.constant 0 : index
    %250 = vector.load %arg7[%c0_246, %c14, %c0_247, %c0_248] : memref<4x16x8x48xf32, #tpu.memory_space<vmem>>, vector<1x1x8x48xf32>
    %251 = vector.shape_cast %250 : vector<1x1x8x48xf32> to vector<8x48xf32>
    %c1_249 = arith.constant 1 : index
    %c14_250 = arith.constant 14 : index
    %c0_251 = arith.constant 0 : index
    %c0_252 = arith.constant 0 : index
    %252 = vector.load %arg7[%c1_249, %c14_250, %c0_251, %c0_252] : memref<4x16x8x48xf32, #tpu.memory_space<vmem>>, vector<1x1x8x48xf32>
    %253 = vector.shape_cast %252 : vector<1x1x8x48xf32> to vector<8x48xf32>
    %c2_253 = arith.constant 2 : index
    %c14_254 = arith.constant 14 : index
    %c0_255 = arith.constant 0 : index
    %c0_256 = arith.constant 0 : index
    %254 = vector.load %arg7[%c2_253, %c14_254, %c0_255, %c0_256] : memref<4x16x8x48xf32, #tpu.memory_space<vmem>>, vector<1x1x8x48xf32>
    %255 = vector.shape_cast %254 : vector<1x1x8x48xf32> to vector<8x48xf32>
    %c3_257 = arith.constant 3 : index
    %c14_258 = arith.constant 14 : index
    %c0_259 = arith.constant 0 : index
    %c0_260 = arith.constant 0 : index
    %256 = vector.load %arg7[%c3_257, %c14_258, %c0_259, %c0_260] : memref<4x16x8x48xf32, #tpu.memory_space<vmem>>, vector<1x1x8x48xf32>
    %257 = vector.shape_cast %256 : vector<1x1x8x48xf32> to vector<8x48xf32>
    %258 = arith.mulf %24, %251 : vector<8x48xf32>
    %259 = arith.mulf %5, %253 : vector<8x48xf32>
    %260 = arith.addf %258, %259 : vector<8x48xf32>
    %261 = arith.addf %260, %255 : vector<8x48xf32>
    %cst_261 = arith.constant 0.000000e+00 : f32
    %262 = vector.broadcast %cst_261 : f32 to vector<8x48xf32>
    %263 = arith.maximumf %261, %262 : vector<8x48xf32>
    %264 = arith.mulf %263, %257 : vector<8x48xf32>
    %265 = arith.addf %249, %264 : vector<8x48xf32>
    %c0_262 = arith.constant 0 : index
    %c15 = arith.constant 15 : index
    %c0_263 = arith.constant 0 : index
    %c0_264 = arith.constant 0 : index
    %266 = vector.load %arg7[%c0_262, %c15, %c0_263, %c0_264] : memref<4x16x8x48xf32, #tpu.memory_space<vmem>>, vector<1x1x8x48xf32>
    %267 = vector.shape_cast %266 : vector<1x1x8x48xf32> to vector<8x48xf32>
    %c1_265 = arith.constant 1 : index
    %c15_266 = arith.constant 15 : index
    %c0_267 = arith.constant 0 : index
    %c0_268 = arith.constant 0 : index
    %268 = vector.load %arg7[%c1_265, %c15_266, %c0_267, %c0_268] : memref<4x16x8x48xf32, #tpu.memory_space<vmem>>, vector<1x1x8x48xf32>
    %269 = vector.shape_cast %268 : vector<1x1x8x48xf32> to vector<8x48xf32>
    %c2_269 = arith.constant 2 : index
    %c15_270 = arith.constant 15 : index
    %c0_271 = arith.constant 0 : index
    %c0_272 = arith.constant 0 : index
    %270 = vector.load %arg7[%c2_269, %c15_270, %c0_271, %c0_272] : memref<4x16x8x48xf32, #tpu.memory_space<vmem>>, vector<1x1x8x48xf32>
    %271 = vector.shape_cast %270 : vector<1x1x8x48xf32> to vector<8x48xf32>
    %c3_273 = arith.constant 3 : index
    %c15_274 = arith.constant 15 : index
    %c0_275 = arith.constant 0 : index
    %c0_276 = arith.constant 0 : index
    %272 = vector.load %arg7[%c3_273, %c15_274, %c0_275, %c0_276] : memref<4x16x8x48xf32, #tpu.memory_space<vmem>>, vector<1x1x8x48xf32>
    %273 = vector.shape_cast %272 : vector<1x1x8x48xf32> to vector<8x48xf32>
    %274 = arith.mulf %24, %267 : vector<8x48xf32>
    %275 = arith.mulf %5, %269 : vector<8x48xf32>
    %276 = arith.addf %274, %275 : vector<8x48xf32>
    %277 = arith.addf %276, %271 : vector<8x48xf32>
    %cst_277 = arith.constant 0.000000e+00 : f32
    %278 = vector.broadcast %cst_277 : f32 to vector<8x48xf32>
    %279 = arith.maximumf %277, %278 : vector<8x48xf32>
    %280 = arith.mulf %279, %273 : vector<8x48xf32>
    %281 = arith.addf %265, %280 : vector<8x48xf32>
    %c0_278 = arith.constant 0 : index
    %c0_279 = arith.constant 0 : index
    %282 = vector.load %arg8[%c0_278, %c0_279] : memref<8x48xf32, #tpu.memory_space<vmem>>, vector<8x48xf32>
    %283 = arith.addf %281, %282 : vector<8x48xf32>
    %284 = vector.extract_strided_slice %283 {offsets = [0, 0], sizes = [8, 12], strides = [1, 1]} : vector<8x48xf32> to vector<8x12xf32>
    %cst_280 = arith.constant dense<0xFF800000> : vector<8xf32>
    %285 = vector.multi_reduction <maximumf>, %284, %cst_280 [1] : vector<8x12xf32> to vector<8xf32>
    %286 = vector.shape_cast %285 : vector<8xf32> to vector<8x1xf32>
    %287 = vector.broadcast %286 : vector<8x1xf32> to vector<8x12xf32>
    %288 = arith.subf %284, %287 : vector<8x12xf32>
    %289 = math.exp %288 : vector<8x12xf32>
    %cst_281 = arith.constant dense<0.000000e+00> : vector<8xf32>
    %290 = vector.multi_reduction <add>, %289, %cst_281 [1] : vector<8x12xf32> to vector<8xf32>
    %291 = vector.shape_cast %290 : vector<8xf32> to vector<8x1xf32>
    %292 = vector.broadcast %291 : vector<8x1xf32> to vector<8x12xf32>
    %293 = arith.divf %289, %292 : vector<8x12xf32>
    %294 = vector.extract_strided_slice %11 {offsets = [0, 0], sizes = [12, 8], strides = [1, 1]} : vector<12x32xf32> to vector<12x8xf32>
    %cst_282 = arith.constant dense<0.000000e+00> : vector<8x8xf32>
    %295 = tpu.matmul %293, %294, %cst_282 {dimension_numbers = #tpu.dot_dimension_numbers<[1], [0], [0], [1], [0, 0, 1, 1], [], []>} : vector<8x12xf32>, vector<12x8xf32>, vector<8x8xf32> -> vector<8x8xf32>
    %296 = vector.extract_strided_slice %283 {offsets = [0, 12], sizes = [8, 12], strides = [1, 1]} : vector<8x48xf32> to vector<8x12xf32>
    %cst_283 = arith.constant dense<0xFF800000> : vector<8xf32>
    %297 = vector.multi_reduction <maximumf>, %296, %cst_283 [1] : vector<8x12xf32> to vector<8xf32>
    %298 = vector.shape_cast %297 : vector<8xf32> to vector<8x1xf32>
    %299 = vector.broadcast %298 : vector<8x1xf32> to vector<8x12xf32>
    %300 = arith.subf %296, %299 : vector<8x12xf32>
    %301 = math.exp %300 : vector<8x12xf32>
    %cst_284 = arith.constant dense<0.000000e+00> : vector<8xf32>
    %302 = vector.multi_reduction <add>, %301, %cst_284 [1] : vector<8x12xf32> to vector<8xf32>
    %303 = vector.shape_cast %302 : vector<8xf32> to vector<8x1xf32>
    %304 = vector.broadcast %303 : vector<8x1xf32> to vector<8x12xf32>
    %305 = arith.divf %301, %304 : vector<8x12xf32>
    %306 = vector.extract_strided_slice %11 {offsets = [0, 8], sizes = [12, 8], strides = [1, 1]} : vector<12x32xf32> to vector<12x8xf32>
    %cst_285 = arith.constant dense<0.000000e+00> : vector<8x8xf32>
    %307 = tpu.matmul %305, %306, %cst_285 {dimension_numbers = #tpu.dot_dimension_numbers<[1], [0], [0], [1], [0, 0, 1, 1], [], []>} : vector<8x12xf32>, vector<12x8xf32>, vector<8x8xf32> -> vector<8x8xf32>
    %308 = vector.extract_strided_slice %283 {offsets = [0, 24], sizes = [8, 12], strides = [1, 1]} : vector<8x48xf32> to vector<8x12xf32>
    %cst_286 = arith.constant dense<0xFF800000> : vector<8xf32>
    %309 = vector.multi_reduction <maximumf>, %308, %cst_286 [1] : vector<8x12xf32> to vector<8xf32>
    %310 = vector.shape_cast %309 : vector<8xf32> to vector<8x1xf32>
    %311 = vector.broadcast %310 : vector<8x1xf32> to vector<8x12xf32>
    %312 = arith.subf %308, %311 : vector<8x12xf32>
    %313 = math.exp %312 : vector<8x12xf32>
    %cst_287 = arith.constant dense<0.000000e+00> : vector<8xf32>
    %314 = vector.multi_reduction <add>, %313, %cst_287 [1] : vector<8x12xf32> to vector<8xf32>
    %315 = vector.shape_cast %314 : vector<8xf32> to vector<8x1xf32>
    %316 = vector.broadcast %315 : vector<8x1xf32> to vector<8x12xf32>
    %317 = arith.divf %313, %316 : vector<8x12xf32>
    %318 = vector.extract_strided_slice %11 {offsets = [0, 16], sizes = [12, 8], strides = [1, 1]} : vector<12x32xf32> to vector<12x8xf32>
    %cst_288 = arith.constant dense<0.000000e+00> : vector<8x8xf32>
    %319 = tpu.matmul %317, %318, %cst_288 {dimension_numbers = #tpu.dot_dimension_numbers<[1], [0], [0], [1], [0, 0, 1, 1], [], []>} : vector<8x12xf32>, vector<12x8xf32>, vector<8x8xf32> -> vector<8x8xf32>
    %320 = vector.extract_strided_slice %283 {offsets = [0, 36], sizes = [8, 12], strides = [1, 1]} : vector<8x48xf32> to vector<8x12xf32>
    %cst_289 = arith.constant dense<0xFF800000> : vector<8xf32>
    %321 = vector.multi_reduction <maximumf>, %320, %cst_289 [1] : vector<8x12xf32> to vector<8xf32>
    %322 = vector.shape_cast %321 : vector<8xf32> to vector<8x1xf32>
    %323 = vector.broadcast %322 : vector<8x1xf32> to vector<8x12xf32>
    %324 = arith.subf %320, %323 : vector<8x12xf32>
    %325 = math.exp %324 : vector<8x12xf32>
    %cst_290 = arith.constant dense<0.000000e+00> : vector<8xf32>
    %326 = vector.multi_reduction <add>, %325, %cst_290 [1] : vector<8x12xf32> to vector<8xf32>
    %327 = vector.shape_cast %326 : vector<8xf32> to vector<8x1xf32>
    %328 = vector.broadcast %327 : vector<8x1xf32> to vector<8x12xf32>
    %329 = arith.divf %325, %328 : vector<8x12xf32>
    %330 = vector.extract_strided_slice %11 {offsets = [0, 24], sizes = [12, 8], strides = [1, 1]} : vector<12x32xf32> to vector<12x8xf32>
    %cst_291 = arith.constant dense<0.000000e+00> : vector<8x8xf32>
    %331 = tpu.matmul %329, %330, %cst_291 {dimension_numbers = #tpu.dot_dimension_numbers<[1], [0], [0], [1], [0, 0, 1, 1], [], []>} : vector<8x12xf32>, vector<12x8xf32>, vector<8x8xf32> -> vector<8x8xf32>
    %332 = tpu.concatenate %295, %307, %319, %331 in 1 : vector<8x8xf32>, vector<8x8xf32>, vector<8x8xf32>, vector<8x8xf32> -> vector<8x32xf32>
    %c0_292 = arith.constant 0 : index
    %c0_293 = arith.constant 0 : index
    %c0_294 = arith.constant 0 : index
    %333 = vector.load %arg9[%c0_292, %c0_293, %c0_294] : memref<1x8x32xf32, #tpu.memory_space<vmem>>, vector<1x8x32xf32>
    %334 = vector.shape_cast %333 : vector<1x8x32xf32> to vector<8x32xf32>
    %335 = vector.shape_cast %332 : vector<8x32xf32> to vector<1x8x32xf32>
    tpu.vector_store %arg9[%c0_292, %c0_293, %c0_294], %335 {strides = array<i32>} : memref<1x8x32xf32, #tpu.memory_space<vmem>>, vector<1x8x32xf32>,
    return
  }
  func.func @transform_0(%arg0: i32) -> (i32, i32, i32) {
    %c0_i32 = arith.constant 0 : i32
    %c0_i32_0 = arith.constant 0 : i32
    %c0_i32_1 = arith.constant 0 : i32
    return %arg0, %c0_i32, %c0_i32_0 : i32, i32, i32
  }
  func.func @transform_1(%arg0: i32) -> (i32, i32, i32) {
    %c0_i32 = arith.constant 0 : i32
    %c0_i32_0 = arith.constant 0 : i32
    %c0_i32_1 = arith.constant 0 : i32
    return %arg0, %c0_i32, %c0_i32_0 : i32, i32, i32
  }
  func.func @transform_2(%arg0: i32) -> (i32, i32, i32) {
    %c0_i32 = arith.constant 0 : i32
    %c0_i32_0 = arith.constant 0 : i32
    %c0_i32_1 = arith.constant 0 : i32
    return %arg0, %c0_i32, %c0_i32_0 : i32, i32, i32
  }
  func.func @transform_3(%arg0: i32) -> (i32, i32) {
    %c0_i32 = arith.constant 0 : i32
    %c0_i32_0 = arith.constant 0 : i32
    %c0_i32_1 = arith.constant 0 : i32
    return %c0_i32, %c0_i32_0 : i32, i32
  }
  func.func @transform_4(%arg0: i32) -> (i32, i32) {
    %c0_i32 = arith.constant 0 : i32
    %c0_i32_0 = arith.constant 0 : i32
    %c0_i32_1 = arith.constant 0 : i32
    return %c0_i32, %c0_i32_0 : i32, i32
  }
  func.func @transform_5(%arg0: i32) -> (i32, i32) {
    %c0_i32 = arith.constant 0 : i32
    %c0_i32_0 = arith.constant 0 : i32
    %c0_i32_1 = arith.constant 0 : i32
    return %c0_i32, %c0_i32_0 : i32, i32
  }
  func.func @transform_6(%arg0: i32) -> (i32, i32, i32, i32) {
    %c0_i32 = arith.constant 0 : i32
    %c0_i32_0 = arith.constant 0 : i32
    %c0_i32_1 = arith.constant 0 : i32
    %c0_i32_2 = arith.constant 0 : i32
    %c0_i32_3 = arith.constant 0 : i32
    return %c0_i32, %c0_i32_0, %c0_i32_1, %c0_i32_2 : i32, i32, i32, i32
  }
  func.func @transform_7(%arg0: i32) -> (i32, i32) {
    %c0_i32 = arith.constant 0 : i32
    %c0_i32_0 = arith.constant 0 : i32
    %c0_i32_1 = arith.constant 0 : i32
    return %c0_i32, %c0_i32_0 : i32, i32
  }
  func.func @transform_8(%arg0: i32) -> (i32, i32, i32) {
    %c0_i32 = arith.constant 0 : i32
    %c0_i32_0 = arith.constant 0 : i32
    %c0_i32_1 = arith.constant 0 : i32
    return %arg0, %c0_i32, %c0_i32_0 : i32, i32, i32
  }
}

</mosaic_0001>

<bundles_post_ra>
// kernel: tpu_custom_call.1
= control target key start
LH: loop header
LB: loop body
LE: loop exit
PB: predicated region body
PF: predicated region fallthrough
CT: control target
= control target key end

     0   :  { %s2849_s0 = inlined_call_operand.hbm [shape: f32[2,8,32], index: 0, kind: input, shape index: {}]   ;;  %s2850_s1 = inlined_call_operand.vmem [shape: f32[2,12,32], index: 1, kind: input, shape index: {}]   ;;  %s2851_s2 = inlined_call_operand.hbm [shape: f32[2,8,48], index: 2, kind: input, shape index: {}]   ;;  %s2852_s3 = inlined_call_operand.vmem [shape: f32[32,32], index: 3, kind: input, shape index: {}]   ;;  %s2853_s4 = inlined_call_operand.vmem [shape: f32[32,32], index: 4, kind: input, shape index: {}]   ;;  %s2854_s5 = inlined_call_operand.hbm [shape: f32[32,32], index: 5, kind: input, shape index: {}]   ;;  %s2855_s6 = inlined_call_operand.hbm [shape: f32[4,16,8,48], index: 6, kind: input, shape index: {}]   ;;  %s2856_s7 = inlined_call_operand.vmem [shape: f32[8,48], index: 7, kind: input, shape index: {}]   ;;  %s2857_s8 = inlined_call_operand.hbm [shape: f32[2,8,32], index: 8, kind: output, shape index: {}]  }
   0x1   :  { %2865 = sst [smem:[#allocation19_spill]] %s2854_s5 }
   0x2   :  { %2866 = sst [smem:[#allocation20_spill]] %s2855_s6 }
   0x3   :  { %13 = vsyncpa [#allocation3], 0 }
   0x4   :  { %15 = vsyncpa [#allocation3 + $0x1], 0 }
   0x5   :  { %16 = vsyncpa [#allocation6], 0 }
   0x6   :  { %18 = vsyncpa [#allocation6 + $0x1], 0 }
   0x7   :  { %19 = vsyncpa [#allocation9], 0 }
   0x8   :  { %20 = vsyncpa [#allocation4], 0 }
   0x9   :  { %22 = vsyncpa [#allocation4 + $0x1], 0  ;;  %s2403_s27 = smov 0   ;;  %s2405_s28 = smov 0  }
   0xa   :  { %s2407_s29 = smov 0   ;;  %s2409_s30 = smov 0  }
   0xb LB: > { %2867 = sst [smem:[#allocation16_spill]] %s2331_s29  ;;  %s2424_s9 = sadd.s32 4294967295, %s2335_s30   ;;  %s2335_s30 = sphi %s2409_s30, %s2892_s30   ;;  %s2331_s29 = sphi %s2407_s29, %s2894_s29   ;;  %s2327_s28 = sphi %s2405_s28, %s2896_s28   ;;  %s2323_s27 = sphi %s2403_s27, %s2895_s27  }
   0xc   : > { %s1776_s10 = sadd.s32 4294967294, %s2335_s30   ;;  %p48_p0 = scmp.ne.s32.totalorder %s2327_s28, %s2323_s27 }
   0xd   : > { %p2858_p1 = scmp.eq.s32.totalorder %s2424_s9, 0  ;;  %p235_p3 = scmp.eq.s32.totalorder %s1776_s10, 1 }
   0xe   : > { %p1777_p5 = scmp.ge.s32.totalorder %s2335_s30, 1  ;;  %p242_p7 = scmp.lt.s32.totalorder %s2335_s30, 3 }
   0xf   : > { %p2433_p4 = por %p2858_p1, %p48_p0  ;;  %p2438_p6 = por %p235_p3, %p48_p0 }
  0x10   : > { %p2443_p8 = pnand %p1777_p5, %p242_p7  ;;  %s2337_s14 = smov [#allocation7]  }
  0x11   : > { %s2868_s11 = scalar_select %p2433_p4, 1, 0 }
  0x12   : > { %s2869_s12 = scalar_select %p2438_p6, 1, 0 }
  0x13   : > { %s2870_s13 = scalar_select %p2443_p8, 1, 0 }
  0x14   : > { %s260_s15 = sshll.u32 %s2337_s14, 4  ;;  %p2021_p9 = pneg %p2443_p8  ;;  %s2447_s15 = int_to_ptr.vmem [resolvable:$true] %s260_s15 }
  0x15   : > { %s2338_s17 = smov [#allocation8]   ;;  %s2872_s5 = sld [smem:[#allocation19_spill]] }
  0x16   : > { %p2454_p11 = pnand %p2021_p9, %p2858_p1  ;;  %s273_s18 = sshll.u32 %s2338_s17, 4  ;;  %s2458_s18 = int_to_ptr.vmem [resolvable:$true] %s273_s18 }
  0x18   : > { %p2143_p13 = pneg %p2454_p11 }
  0x1b   : > { %s2141_s21 = scalar_lea.hbm %s2872_s5, 512 }
  0x1c   : > { %p2142_p12 = scmp.ne.s32.totalorder %s2872_s5, %s2141_s21  ;;  %p2148_p5 = scmp.lt.u32.totalorder %s2141_s21, %s2872_s5 }
  0x1e   : > { %p2144_p0 = pnand %p2143_p13, %p2142_p12 }
  0x20   : > { %p2145_p3 = pneg %p2144_p0 }
  0x22   : > { %p2150_p7 = pnand %p2148_p5, %p2145_p3 }
  0x24   : > { %2153 = shalt.err (!%p2150_p7)
}
  0x25   : > { %s2154_s26 = scalar_lea.vmem %s2447_s15, 512  ;;  %p2162_p2 = scmp.lt.s32.totalorder %s2447_s15, %s2447_s15 }
  0x26   : > { %p2155_p9 = scmp.ne.s32.totalorder %s2447_s15, %s2154_s26  ;;  %p2163_p12 = scmp.lt.s32.totalorder %s2154_s26, %s2154_s26 }
  0x28   : > { %p2157_p10 = pnand %p2155_p9, %p2143_p13  ;;  %p2164_p0 = por %p2163_p12, %p2162_p2 }
  0x2a   : > { %p2158_p1 = pneg %p2157_p10 }
  0x2c   : > { %p2165_p6 = pnand %p2164_p0, %p2158_p1 }
  0x2e   : > { %2168 = shalt.err (!%p2165_p6)
}
  0x2f   : > { %s2339_s10 = smov 128   ;;  %s2340_s14 = smov 8  }
  0x30   : > { %2024 = dma.hbm_to_vmem [thread:$0]  (!%p2454_p11), %s2872_s5, 512, %s2447_s15, [#allocation6], %s2339_s10, %s2339_s10, %s2340_s14  }
  0x31   : > { %s2873_s6 = sld [smem:[#allocation20_spill]] }
  0x37   : > { %s2169_s22 = scalar_lea.hbm %s2873_s6, 8192 }
  0x38   : > { %p2170_p2 = scmp.ne.s32.totalorder %s2873_s6, %s2169_s22  ;;  %p2176_p10 = scmp.lt.u32.totalorder %s2169_s22, %s2873_s6 }
  0x3a   : > { %p2172_p1 = pnand %p2170_p2, %p2143_p13 }
  0x3c   : > { %p2173_p6 = pneg %p2172_p1 }
  0x3e   : > { %p2178_p3 = pnand %p2176_p10, %p2173_p6 }
  0x40   : > { %2181 = shalt.err (!%p2178_p3)
}
  0x41   : > { %s2182_s15 = scalar_lea.vmem %s2458_s18, 8192  ;;  %p2190_p12 = scmp.lt.s32.totalorder %s2458_s18, %s2458_s18 }
  0x42   : > { %p2183_p5 = scmp.ne.s32.totalorder %s2458_s18, %s2182_s15  ;;  %p2191_p0 = scmp.lt.s32.totalorder %s2182_s15, %s2182_s15 }
  0x44   : > { %p2185_p7 = pnand %p2183_p5, %p2143_p13  ;;  %p2192_p2 = por %p2191_p0, %p2190_p12 }
  0x46   : > { %p2186_p9 = pneg %p2185_p7 }
  0x48   : > { %p2193_p1 = pnand %p2192_p2, %p2186_p9 }
  0x4a   : > { %2196 = shalt.err (!%p2193_p1)
}
  0x4b   : > { %2027 = dma.hbm_to_vmem [thread:$0]  (!%p2454_p11), %s2873_s6, 8192, %s2458_s18, [#allocation9], %s2339_s10, %s2339_s10, %s2340_s14  }
  0x4c   : > { %s2513_s20 = sadd.s32 1, %s2335_s30   ;;  %s35_s16 = sadd.s32 1, %s2331_s29 }
  0x4d   : > { %2874 = sst [smem:[#allocation17_spill]] %s2513_s20  ;;  %s32_s21 = ssub.s32 %s2335_s30, %s2513_s20 }
  0x4e   : > { %p42_p13 = scmp.ne.s32.totalorder %s2331_s29, %s2327_s28  ;;  %p33_p6 = scmp.eq.s32.totalorder %s32_s21, 0 }
  0x4f   : > { %p43_p10 = scmp.eq.s32.totalorder %s2335_s30, 0  ;;  %p2875_p3 = scmp.eq.s32.totalorder %s2424_s9, 1 }
  0x50   : > { %p2041_p7 = scmp.lt.s32.totalorder %s2335_s30, 2  ;;  %s290_s24 = sand.u32 1, %s2331_s29  }
  0x51   : > { %p2523_p5 = por %p2875_p3, %p42_p13  ;;  %p44_p9 = por %p43_p10, %p42_p13 }
  0x52   : > { %s2529_s23 = scalar_select %p33_p6, %s2331_s29, %s35_s16  }
  0x53   : > { %s2876_s22 = scalar_select %p2523_p5, 1, 0 }
  0x54   : > { %2877 = sst [smem:[#allocation18_spill]] %s2529_s23  ;;  %s2532_s18 = sshll.u32 %s290_s24, 3 }
  0x55   : > { %s1782_s10 = sshll.u32 %s2335_s30, 7  ;;  %s294_s15 = scalar_lea.vmem [#allocation2], %s2532_s18 }
  0x56   : > { %s2538_s26 = scalar_lea.hbm %s2849_s0, %s1782_s10  ;;  %s301_s17 = sshll.u32 %s294_s15, 4  ;;  %s2541_s17 = int_to_ptr.vmem [resolvable:$true] %s301_s17 }
  0x57   : > { %p2543_p11 = pnand %p2041_p7, %p44_p9  ;;  %s2550_s14 = scalar_lea.hbm %s2851_s2, %s1782_s10 }
  0x58   : > { %s316_s25 = sand.u32 1, %s2335_s30   ;;  %s291_s5 = scalar_lea.sflag [#allocation3], %s290_s24 }
  0x59   : > { %s2197_s6 = scalar_lea.hbm %s2538_s26, 128  ;;  %p2199_p0 = pneg %p2543_p11 }
  0x5a   : > { %p2198_p12 = scmp.ne.s32.totalorder %s2538_s26, %s2197_s6  ;;  %s2202_s29 = scalar_lea.hbm %s2849_s0, 256 }
  0x5b   : > { %p2203_p13 = scmp.lt.u32.totalorder %s2538_s26, %s2849_s0  ;;  %p2204_p6 = scmp.lt.u32.totalorder %s2202_s29, %s2197_s6 }
  0x5c   : > { %p2200_p2 = pnand %p2199_p0, %p2198_p12  ;;  %p2206_p3 = scmp.lt.u32.totalorder %s2197_s6, %s2538_s26 }
  0x5d   : > { %p2205_p10 = por %p2204_p6, %p2203_p13 }
  0x5e   : > { %p2201_p1 = pneg %p2200_p2 }
  0x5f   : > { %p2207_p7 = por %p2206_p3, %p2205_p10 }
  0x61   : > { %p2208_p9 = pnand %p2207_p7, %p2201_p1 }
  0x63   : > { %2211 = shalt.err (!%p2208_p9)
}
  0x64   : > { %s2212_s24 = scalar_lea.vmem %s2541_s17, 128  ;;  %s2341_s23 = smov [#allocation2]  }
  0x65   : > { %p2213_p12 = scmp.ne.s32.totalorder %s2541_s17, %s2212_s24  ;;  %s2217_s10 = sshll.u32 %s2341_s23, 4  ;;  %s2218_s10 = int_to_ptr.vmem [resolvable:$false] %s2217_s10 }
  0x66   : > { %s2219_s20 = scalar_lea.vmem %s2218_s10, 256  ;;  %p2220_p4 = scmp.lt.s32.totalorder %s2541_s17, %s2218_s10 }
  0x67   : > { %p2215_p2 = pnand %p2213_p12, %p2199_p0  ;;  %p2221_p13 = scmp.lt.s32.totalorder %s2219_s20, %s2212_s24 }
  0x69   : > { %p2216_p5 = pneg %p2215_p2  ;;  %p2222_p6 = por %p2221_p13, %p2220_p4 }
  0x6b   : > { %p2223_p10 = pnand %p2222_p6, %p2216_p5 }
  0x6d   : > { %2226 = shalt.err (!%p2223_p10)
}
  0x6e   : > { %2031 = dma.hbm_to_vmem [thread:$0]  (!%p2543_p11), %s2538_s26, 128, %s2541_s17, %s291_s5  }
  0x6f   : > { %s320_s6 = scalar_lea.vmem [#allocation5], %s2532_s18  ;;  %s317_s21 = scalar_lea.sflag [#allocation6], %s316_s25 }
  0x70   : > { %s327_s29 = sshll.u32 %s320_s6, 4  ;;  %s2227_s15 = scalar_lea.hbm %s2550_s14, 128  ;;  %s328_s29 = int_to_ptr.vmem [resolvable:$true] %s327_s29 }
  0x71   : > { %p2228_p4 = scmp.ne.s32.totalorder %s2550_s14, %s2227_s15  ;;  %s2232_s23 = scalar_lea.hbm %s2851_s2, 256 }
  0x72   : > { %p2233_p3 = scmp.lt.u32.totalorder %s2550_s14, %s2851_s2  ;;  %p2234_p7 = scmp.lt.u32.totalorder %s2232_s23, %s2227_s15 }
  0x73   : > { %p2230_p5 = pnand %p2228_p4, %p2199_p0  ;;  %p2236_p12 = scmp.lt.u32.totalorder %s2227_s15, %s2550_s14 }
  0x74   : > { %p2235_p9 = por %p2234_p7, %p2233_p3 }
  0x75   : > { %p2231_p1 = pneg %p2230_p5 }
  0x76   : > { %p2237_p2 = por %p2236_p12, %p2235_p9 }
  0x78   : > { %p2238_p13 = pnand %p2237_p2, %p2231_p1 }
  0x7a   : > { %2241 = shalt.err (!%p2238_p13)
}
  0x7b   : > { %s2242_s5 = scalar_lea.vmem %s328_s29, 128  ;;  %s2342_s18 = smov [#allocation5]  }
  0x7c   : > { %p2243_p6 = scmp.ne.s32.totalorder %s328_s29, %s2242_s5  ;;  %s2247_s26 = sshll.u32 %s2342_s18, 4  ;;  %s2248_s26 = int_to_ptr.vmem [resolvable:$false] %s2247_s26 }
  0x7d   : > { %s2249_s17 = scalar_lea.vmem %s2248_s26, 256  ;;  %p2250_p5 = scmp.lt.s32.totalorder %s328_s29, %s2248_s26 }
  0x7e   : > { %p2245_p10 = pnand %p2243_p6, %p2199_p0  ;;  %p2251_p8 = scmp.lt.s32.totalorder %s2249_s17, %s2242_s5 }
  0x80   : > { %p2246_p4 = pneg %p2245_p10  ;;  %p2252_p3 = por %p2251_p8, %p2250_p5 }
  0x82   : > { %p2253_p7 = pnand %p2252_p3, %p2246_p4 }
  0x84   : > { %2256 = shalt.err (!%p2253_p7)
}
  0x85   : > { %2034 = dma.hbm_to_vmem [thread:$0]  (!%p2543_p11), %s2550_s14, 128, %s328_s29, %s317_s21  }
  0x86   : > { %p2879_p1 = scmp.ne.s32.totalorder %s2870_s13, 0 }
  0x87   : > { %s2603_s25 = sand.u32 (!%p2879_p1), 1, %s2327_s28   ;;  %p2880_p8 = scmp.ne.s32.totalorder (!%p2879_p1), %s2868_s11, 0 }
  0x88   : > { %336 = sbr.rel (%p2879_p1) target bundleno = 1777 (0x6f1), region = 52  ;;  %s2606_s6 = sshll.u32 (!%p2879_p1), %s2603_s25, 3 }
  0x89   : > { %s339_s15 = scalar_lea.sflag (!%p2879_p1), [#allocation3], %s2603_s25  ;;  %s342_s16 = scalar_lea.vmem (!%p2879_p1), [#allocation2], %s2606_s6 }
  0x8f   : > { %2302 = dma.done.wait (%p2880_p8), %s339_s15, 128  }
  0x90   : > { %2304 = vsyncadd (%p2880_p8), %s339_s15, 4294967168  ;;  %s347_s13 = sand.u32 1, %s2424_s9   ;;  %s351_s14 = scalar_lea.vmem [#allocation5], %s2606_s6 }
  0x91   : > { %s348_s19 = scalar_lea.sflag [#allocation6], %s347_s13 }
  0x92   : > { %2306 = dma.done.wait (%p2880_p8), %s348_s19, 128  }
  0x93   : > { %2308 = vsyncadd (%p2880_p8), %s348_s19, 4294967168  ;;  %p2881_p11 = scmp.eq.s32.totalorder %s2424_s9, 0 }
  0x95   : > { %2310 = dma.done.wait (%p2881_p11), [#allocation6], 512   ;;  %p2882_p0 = pmov %p2881_p11 }
  0x97   : > { %2312 = vsyncadd (%p2882_p0), [#allocation6], 4294966784  ;;  %p2883_p9 = pmov %p2882_p0 }
  0x98   : > { %p2884_p12 = pmov %p2882_p0 }
  0x99   : > { %2314 = dma.done.wait (%p2883_p9), [#allocation9], 8192  }
  0x9a   : > { %2316 = vsyncadd (%p2884_p12), [#allocation9], 4294959104  ;;  %p402_p2 = scmp.lt.s32.totalorder %s2424_s9, 1  ;;  %v2343_v0 = vmov 0.0|0.0   ;;  %vm2344_vm0 = vmmov 0   ;;  %v2345_v1 = vmov 0.0  }
  0x9b   : > { %1953 = vmatprep.subr.bf16.mxu0 %v2343_v0  ;;  %1872 = vmatprep.mubr.msk.f32.mxu0 %vm2344_vm0, %v2345_v1  ;;  %vm415_vm1 = vcmask 261120   ;;  %v489_v2 = vld [vmem:[%s2853_s4] sm:$0xff]  ;;  %v490_v3 = vld [vmem:[%s2853_s4 + $0x8] sm:$0xff]  ;;  %v491_v4 = vld [vmem:[%s2853_s4 + $0x10] sm:$0xff]  ;;  %vm653_vm2 = vcmask 64512   ;;  %s2348_s18 = smov 112  }
  0x9c   : > { %s403_s11 = scalar_select %p402_p2, %s2424_s9, 1  ;;  %v1959_v5 = vpack.c.bf16 %v490_v3, %v489_v2  ;;  %v492_v6 = vld [vmem:[%s2853_s4 + $0x18] sm:$0xff]  ;;  %v411_v9 = vld [vmem:[%s2852_s3] sm:$0xff]  ;;  %v412_v10 = vld [vmem:[%s2852_s3 + $0x8] sm:$0xff]  ;;  %vm1252_vm4 = vcmask 1043456   ;;  %vm2349_vm5 = vmmov 1  }
  0x9d   : > { %v1963_v8 = vpack.c.bf16 %v492_v6, %v491_v4  ;;  %v413_v11 = vld [vmem:[%s2852_s3 + $0x10] sm:$0xff]  ;;  %v1954_v12 = vpack.c.bf16 %v412_v10, %v411_v9  ;;  %v414_v13 = vld [vmem:[%s2852_s3 + $0x18] sm:$0xff]  ;;  %v407_v16 = vld [vmem:[%s342_s16] sm:$0xff]  ;;  %s2346_s16 = smov 104   ;;  %s2350_s26 = smov 12   ;;  %vm991_vm7 = vcmask 97280  }
  0x9e   : > { %s1822_s29 = sshll.u32 %s403_s11, 4  ;;  %1960 = vmatprep.subr.bf16.mxu1 %v1959_v5  ;;  %v1957_v14 = vpack.c.bf16 %v414_v13, %v413_v11  ;;  %v574_v17 = vld [vmem:[#allocation7] sm:$0xff]  ;;  %v575_v18 = vld [vmem:[#allocation7 + $0x8] sm:$0xff]  ;;  %v576_v19 = vld [vmem:[#allocation7 + $0x10] sm:$0xff]  ;;  %s2351_s17 = smov 24   ;;  %vm993_vm8 = vcmask 195584  }
  0x9f   : > { %s406_s23 = scalar_lea.vmem %s2850_s1, %s1822_s29  ;;  %1962 = vmatpush3.bf16.msra.mxu1 %v1959_v5  ;;  %1955 = vmatpush3.bf16.msra.mxu0 %v1954_v12  ;;  %v1967_v20 = vpack.c.bf16 %v575_v18, %v574_v17  ;;  %v577_v21 = vld [vmem:[#allocation7 + $0x18] sm:$0xff]  ;;  %vm2676_vm3 = vmpackc.low %vm653_vm2, %vm653_vm2  ;;  %s2352_s15 = smov 36   ;;  %v999_v60 = vld [vmem:[#allocation8 + $0x80] sm:$0xff]  ;;  %vm995_vm9 = vcmask 293888   ;;  %vm1425_vm10 = vcmask 294080   ;;  %vm1326_vm11 = vcmask 195680  }
  0xa0   : > { %v408_v7 = vld [vmem:[%s406_s23] sm:$0xff]  ;;  %1964 = vmatprep.subr.bf16.mxu1 %v1963_v8  ;;  %1956 = vmatprep.subr.bf16.mxu0 %v2343_v0  ;;  %v409_v15 = vld [vmem:[%s406_s23 + $0x8] sm:$0xf]  ;;  %v1971_v22 = vpack.c.bf16 %v577_v21, %v576_v19  ;;  %s2347_s23 = smov 120   ;;  %vm2703_vm6 = vmpackc.low %vm1252_vm4, %vm2349_vm5  ;;  %vm1523_vm12 = vcmask 392480   ;;  %s2353_s19 = smov 116  }
  0xa1   : > { %1883 = vmatprep.mubr.msk.f32.mxu1 %vm415_vm1, %v408_v7  ;;  %v2722_v59 = vld [vmem:[%s351_s14] sm:$0xff]  ;;  %v997_v62 = vld [vmem:[#allocation8] sm:$0xff]  ;;  %v1014_v63 = vld [vmem:[#allocation8 + $0x88] sm:$0xff]  ;;  %s2354_s11 = smov 92   ;;  %s2355_s29 = smov 8   ;;  %vm1634_vm13 = vcmask 130048  }
  0xa2   : > { %v1029_v2 = vld [vmem:[#allocation8 + $0x90] sm:$0xff]  ;;  %v1044_v3 = vld [vmem:[#allocation8 + $0x98] sm:$0xff]  ;;  %v1012_v4 = vld [vmem:[#allocation8 + $0x8] sm:$0xff]  ;;  %v1020_v13 = vmul.f32 %v1014_v63, %v2722_v59  ;;  %s2356_s21 = smov 16   ;;  %s1819_s24 = sshll.u32 %s2424_s9, 7 }
  0xa3   : > { %1966 = vmatpush3.bf16.msra.mxu1 %v1963_v8  ;;  %1958 = vmatpush3.bf16.msra.mxu0 %v1957_v14  ;;  %v1059_v5 = vld [vmem:[#allocation8 + $0xa0] sm:$0xff]  ;;  %v1074_v6 = vld [vmem:[#allocation8 + $0xa8] sm:$0xff]  ;;  %v1005_v8 = vmul.f32 %v999_v60, %v2722_v59  ;;  %v1027_v9 = vld [vmem:[#allocation8 + $0x10] sm:$0xff]  ;;  %s401_s10 = scalar_lea.vmem [#allocation10], %s2606_s6  ;;  %s1639_s9 = scalar_lea.sflag [#allocation4], %s2603_s25 }
  0xa4   : > { %1975 = vmatprep.subr.bf16.mxu1 %v2343_v0  ;;  %1968 = vmatprep.subr.bf16.mxu0 %v1967_v20  ;;  %v1042_v10 = vld [vmem:[#allocation8 + $0x18] sm:$0xff]  ;;  %v1057_v11 = vld [vmem:[#allocation8 + $0x20] sm:$0xff]  ;;  %v1072_v17 = vld [vmem:[#allocation8 + $0x28] sm:$0xff]  ;;  %v1065_v21 = vmul.f32 %v1059_v5, %v2722_v59  ;;  %s1652_s20 = sshll.u32 %s401_s10, 4  ;;  %p2889_p6 = scmp.ne.s32.totalorder %s2876_s22, 0  ;;  %s2805_s20 = int_to_ptr.vmem [resolvable:$true] %s1652_s20 }
  0xa5   : > { %v1087_v18 = vld [vmem:[#allocation8 + $0x30] sm:$0xff]  ;;  %v1102_v28 = vld [vmem:[#allocation8 + $0x38] sm:$0xff]  ;;  %s2257_s6 = scalar_lea.vmem %s2805_s20, 128 }
  0xa6   : > { %1884 = vmatmul.mubr.msk.f32.vlgmr.msra.gmra.mrb[0].mxu1 %vm415_vm1, %v409_v15  ;;  %1873 = vmatmul.mubr.msk.f32.vlgmr.msra.gmra.mrb[0].mxu0 %vm415_vm1, %v407_v16  ;;  %v1050_v16 = vmul.f32 %v1044_v3, %v2722_v59  ;;  %v1089_v19 = vld [vmem:[#allocation8 + $0xb0] sm:$0xff]  ;;  %p2258_p13 = scmp.ne.s32.totalorder %s2805_s20, %s2257_s6 }
  0xa7   : > { %1901 = vmatprep.mubr.msk.f32.mxu1 %vm2344_vm0, %v2345_v1  ;;  %1894 = vmatprep.mubr.msk.f32.mxu0 %vm415_vm1, %v408_v7  ;;  %v1149_v3 = vld [vmem:[#allocation8 + $0xd0] sm:$0xff] }
  0xa8   : > { %1970 = vmatpush3.bf16.msra.mxu0 %v1967_v20  ;;  %p2259_p10 = pnand %p2258_p13, %p2889_p6 }
  0xa9   : > { %1972 = vmatprep.subr.bf16.mxu0 %v1971_v22 }
  0xaa   : > { %p2260_p4 = pneg %p2259_p10 }
  0xac   : > { %1974 = vmatpush3.bf16.msra.mxu0 %v1971_v22  ;;  %v1080_v22 = vmul.f32 %v1074_v6, %v2722_v59 }
  0xad   : > { %1979 = vmatprep.subr.bf16.mxu0 %v2343_v0 }
  0xaf   : > { %1895 = vmatmul.mubr.msk.f32.vlgmr.msra.gmra.mrb[2].mxu0 %vm415_vm1, %v409_v15  ;;  %v1035_v15 = vmul.f32 %v1029_v2, %v2722_v59  ;;  %v1091_v2 = vld [vmem:[#allocation8 + $0x130] sm:$0xff] }
  0xb0   : > { %1908 = vmatprep.mubr.msk.f32.mxu0 %vm2344_vm0, %v2345_v1 }
 0x179   : > { %v1885_v23 = vpop.f32.mrb[0].mxu1  ;;  %v485_v25 = vpop.f32.mrb[0].mxu0 }
 0x17a   : > { %v565_v24 = vpop.f32.mrb[1].mxu1  ;;  %v1874_v29 = vpop.f32.mrb[1].mxu0 }
 0x17b   : > { %v1976_v26 = vpack.c.bf16 %v1885_v23, %v565_v24  ;;  %v2105_v27 = vpack.i.bf16 %v1885_v23, %v565_v24  ;;  %v1104_v29 = vld [vmem:[#allocation8 + $0xb8] sm:$0xff] }
 0x17d   : > { %2106 = vrot.lane.b32.xlu1 %v2105_v27, %s2346_s16  ;;  %2096 = vrot.lane.b32.xlu0 %v2105_v27, %s2347_s23 }
 0x17e   : > { %1978 = vmatpush3.bf16.xpose.msk.msra.mxu1 %vm2676_vm3, %v1976_v26 }
 0x17f   : > { %1983 = vmatprep.subr.bf16.mxu1 %v2343_v0 }
 0x181   : > { %2101 = vrot.lane.b32.xlu0 %v2105_v27, %s2348_s18  ;;  %733 = vrot.lane.b32.xlu1 %v485_v25, %s2347_s23  ;;  %v1001_v27 = vld [vmem:[#allocation8 + $0x100] sm:$0xff] }
 0x182   : > { %v1896_v30 = vpop.f32.mrb[2].mxu0 }
 0x183   : > { %v644_v31 = vpop.f32.mrb[3].mxu0 }
 0x184   : > { %v1992_v32 = vpack.c.bf16 %v1896_v30, %v644_v31  ;;  %v2717_v51 = vpack.i.bf16 %v1896_v30, %v644_v31  ;;  %v1016_v30 = vld [vmem:[#allocation8 + $0x108] sm:$0xff]  ;;  %v1031_v31 = vld [vmem:[#allocation8 + $0x110] sm:$0xff] }
 0x185   : > { %1902 = vmatmul.mubr.msk.f32.vlgmr.msra.gmra.mrb[2].mxu1 %vm653_vm2, %v485_v25  ;;  %815 = vrot.lane.b32.xlu0 %v485_v25, %s2348_s18 }
 0x186   : > { %897 = vrot.lane.b32.xlu1 %v485_v25, %s2346_s16  ;;  %1915 = vmatprep.mubr.msk.f32.mxu1 %vm2344_vm0, %v2345_v1 }
 0x1ef   : > { %v2097_v33 = vpop.permute.xlu0 %2096  ;;  %v2107_v37 = vpop.permute.xlu1 %2106 }
 0x1f0   : > { %v2099_v34 = vunpack.i.h.bf16 %v2097_v33  ;;  %v2098_v35 = vunpack.i.l.bf16 %v2097_v33  ;;  %v2109_v41 = vunpack.i.h.bf16 %v2107_v37  ;;  %v2108_v42 = vunpack.i.l.bf16 %v2107_v37 }
 0x1f2   : > { %v1980_v36 = vpack.c.bf16 %v2099_v34, %v2098_v35  ;;  %v1988_v44 = vpack.c.bf16 %v2109_v41, %v2108_v42  ;;  %v1061_v41 = vld [vmem:[#allocation8 + $0x120] sm:$0xff] }
 0x1f3   : > { %v2102_v38 = vpop.permute.xlu0 %2101  ;;  %v734_v45 = vpop.permute.xlu1 %733 }
 0x1f4   : > { %v2104_v39 = vunpack.i.h.bf16 %v2102_v38  ;;  %v2103_v40 = vunpack.i.l.bf16 %v2102_v38  ;;  %1982 = vmatpush3.bf16.xpose.msk.msra.mxu0 %vm2676_vm3, %v1980_v36  ;;  %v1095_v36 = vmul.f32 %v1089_v19, %v2722_v59 }
 0x1f5   : > { %1987 = vmatprep.subr.bf16.mxu0 %v2343_v0 }
 0x1f6   : > { %v1984_v43 = vpack.c.bf16 %v2104_v39, %v2103_v40 }
 0x1f7   : > { %v816_v47 = vpop.permute.xlu0 %815 }
 0x1f8   : > { %1986 = vmatpush3.bf16.xpose.msk.msra.mxu1 %vm2676_vm3, %v1984_v43  ;;  %v898_v48 = vpop.permute.xlu1 %897 }
 0x1f9   : > { %1991 = vmatprep.subr.bf16.mxu1 %v2343_v0 }
 0x1fb   : > { %1909 = vmatmul.mubr.msk.f32.vlgmr.msra.gmra.mrb[4].mxu0 %vm653_vm2, %v734_v45  ;;  %v1110_v45 = vmul.f32 %v1104_v29, %v2722_v59 }
 0x1fc   : > { %1990 = vmatpush3.bf16.xpose.msk.msra.mxu0 %vm2676_vm3, %v1988_v44  ;;  %1922 = vmatprep.mubr.msk.f32.mxu0 %vm2344_vm0, %v2345_v1 }
 0x1fd   : > { %1999 = vmatprep.subr.bf16.mxu0 %v2343_v0 }
 0x1ff   : > { %1916 = vmatmul.mubr.msk.f32.vlgmr.msra.gmra.mrb[4].mxu1 %vm653_vm2, %v816_v47  ;;  %v1003_v47 = vld [vmem:[#allocation8 + $0x180] sm:$0xff] }
 0x200   : > { %1994 = vmatpush3.bf16.msk.msra.mxu1 %vm2703_vm6, %v1992_v32  ;;  %1929 = vmatprep.mubr.msk.f32.mxu1 %vm2344_vm0, %v2345_v1  ;;  %v1046_v32 = vld [vmem:[#allocation8 + $0x118] sm:$0xff] }
 0x201   : > { %1995 = vmatprep.subr.bf16.mxu1 %v2343_v0 }
 0x203   : > { %1923 = vmatmul.mubr.msk.f32.vlgmr.msra.gmra.mrb[6].mxu0 %vm653_vm2, %v898_v48 }
 0x204   : > { %1943 = vmatprep.mubr.msk.f32.mxu0 %vm2344_vm0, %v2345_v1 }
 0x258   : > { %v729_v49 = vpop.f32.mrb[2].mxu1 }
 0x259   : > { %v1903_v50 = vpop.f32.mrb[3].mxu1 }
 0x2ce   : > { %v811_v52 = vpop.f32.mrb[4].mxu0 }
 0x2cf   : > { %980 = vrot.lane.b32.xlu0 %v811_v52, %s2350_s26  ;;  %v1910_v53 = vpop.f32.mrb[5].mxu0 }
 0x2d0   : > { %v1076_v53 = vld [vmem:[#allocation8 + $0x128] sm:$0xff] }
 0x2d2   : > { %v893_v54 = vpop.f32.mrb[4].mxu1 }
 0x2d3   : > { %984 = vrot.lane.b32.xlu1 %v893_v54, %s2351_s17  ;;  %v1917_v55 = vpop.f32.mrb[5].mxu1  ;;  %v1018_v54 = vld [vmem:[#allocation8 + $0x188] sm:$0xff] }
 0x2d6   : > { %v975_v56 = vpop.f32.mrb[6].mxu0 }
 0x2d7   : > { %988 = vrot.lane.b32.xlu0 %v975_v56, %s2352_s15  ;;  %v1924_v57 = vpop.f32.mrb[7].mxu0 }
 0x2d8   : > { %v1119_v57 = vld [vmem:[#allocation8 + $0xc0] sm:$0xff] }
 0x341   : > { %v981_v58 = vpop.permute.xlu0 %980 }
 0x342   : > { %v992_v7 = vsel %vm991_vm7, %v729_v49, %v981_v58  ;;  %v1134_v58 = vld [vmem:[#allocation8 + $0xc8] sm:$0xff] }
 0x345   : > { %v985_v61 = vpop.permute.xlu1 %984 }
 0x346   : > { %v994_v12 = vsel %vm993_vm8, %v992_v7, %v985_v61  ;;  %v1117_v7 = vld [vmem:[#allocation8 + $0x40] sm:$0xff] }
 0x349   : > { %v989_v14 = vpop.permute.xlu0 %988 }
 0x34a   : > { %v2731_v20 = vsel %vm995_vm9, %v994_v12, %v989_v14  ;;  %v1048_v12 = vld [vmem:[#allocation8 + $0x198] sm:$0xff]  ;;  %v1125_v14 = vmul.f32 %v1119_v57, %v2722_v59 }
 0x34b   : > { %v1004_v23 = vmul.f32 %v997_v62, %v2731_v20  ;;  %v1019_v24 = vmul.f32 %v1012_v4, %v2731_v20  ;;  %v1034_v25 = vmul.f32 %v1027_v9, %v2731_v20  ;;  %v1049_v26 = vmul.f32 %v1042_v10, %v2731_v20  ;;  %v1033_v62 = vld [vmem:[#allocation8 + $0x190] sm:$0xff] }
 0x34c   : > { %v1064_v33 = vmul.f32 %v1057_v11, %v2731_v20  ;;  %v1079_v34 = vmul.f32 %v1072_v17, %v2731_v20  ;;  %v1094_v35 = vmul.f32 %v1087_v18, %v2731_v20  ;;  %v1109_v44 = vmul.f32 %v1102_v28, %v2731_v20  ;;  %v1147_v9 = vld [vmem:[#allocation8 + $0x50] sm:$0xff]  ;;  %v1179_v28 = vld [vmem:[#allocation8 + $0xe0] sm:$0xff] }
 0x34d   : > { %v1006_v37 = vadd.f32 %v1005_v8, %v1004_v23  ;;  %v1021_v38 = vadd.f32 %v1020_v13, %v1019_v24  ;;  %v1036_v39 = vadd.f32 %v1035_v15, %v1034_v25  ;;  %v1051_v40 = vadd.f32 %v1050_v16, %v1049_v26  ;;  %v1132_v8 = vld [vmem:[#allocation8 + $0x48] sm:$0xff]  ;;  %v1106_v13 = vld [vmem:[#allocation8 + $0x138] sm:$0xff]  ;;  %v1063_v24 = vld [vmem:[#allocation8 + $0x1a0] sm:$0xff] }
 0x34e   : > { %v1066_v42 = vadd.f32 %v1065_v21, %v1064_v33  ;;  %v1081_v43 = vadd.f32 %v1080_v22, %v1079_v34  ;;  %v1096_v56 = vadd.f32 %v1095_v36, %v1094_v35  ;;  %v1111_v6 = vadd.f32 %v1110_v45, %v1109_v44  ;;  %v1164_v16 = vld [vmem:[#allocation8 + $0xd8] sm:$0xff]  ;;  %v1177_v34 = vld [vmem:[#allocation8 + $0x60] sm:$0xff]  ;;  %v1136_v44 = vld [vmem:[#allocation8 + $0x148] sm:$0xff] }
 0x34f   : > { %v1007_v48 = vadd.f32 %v1006_v37, %v1001_v27  ;;  %v1022_v49 = vadd.f32 %v1021_v38, %v1016_v30  ;;  %v1037_v50 = vadd.f32 %v1036_v39, %v1031_v31  ;;  %v1052_v52 = vadd.f32 %v1051_v40, %v1046_v32  ;;  %v1162_v22 = vld [vmem:[#allocation8 + $0x58] sm:$0xff]  ;;  %v1121_v32 = vld [vmem:[#allocation8 + $0x140] sm:$0xff]  ;;  %v1192_v39 = vld [vmem:[#allocation8 + $0x68] sm:$0xff] }
 0x350   : > { %v1067_v55 = vadd.f32 %v1066_v42, %v1061_v41  ;;  %v1082_v5 = vadd.f32 %v1081_v43, %v1076_v53  ;;  %v1140_v15 = vmul.f32 %v1134_v58, %v2722_v59  ;;  %v1097_v19 = vadd.f32 %v1096_v56, %v1091_v2  ;;  %v1194_v40 = vld [vmem:[#allocation8 + $0xe8] sm:$0xff]  ;;  %v1207_v53 = vld [vmem:[#allocation8 + $0x70] sm:$0xff] }
 0x351   : > { %v1008_v60 = vmax.f32 %v1007_v48, 0.0  ;;  %v1023_v61 = vmax.f32 %v1022_v49, 0.0  ;;  %v1038_v63 = vmax.f32 %v1037_v50, 0.0  ;;  %v1053_v4 = vmax.f32 %v1052_v52, 0.0  ;;  %v1078_v42 = vld [vmem:[#allocation8 + $0x1a8] sm:$0xff]  ;;  %v1093_v48 = vld [vmem:[#allocation8 + $0x1b0] sm:$0xff] }
 0x352   : > { %v1068_v18 = vmax.f32 %v1067_v55, 0.0  ;;  %v1155_v21 = vmul.f32 %v1149_v3, %v2722_v59  ;;  %v1124_v25 = vmul.f32 %v1117_v7, %v2731_v20  ;;  %v1139_v26 = vmul.f32 %v1132_v8, %v2731_v20  ;;  %v1151_v56 = vld [vmem:[#allocation8 + $0x150] sm:$0xff]  ;;  %v1224_v3 = vld [vmem:[#allocation8 + $0xf8] sm:$0xff] }
 0x353   : > { %v1009_v10 = vmul.f32 %v1008_v60, %v1003_v47  ;;  %v1024_v11 = vmul.f32 %v1023_v61, %v1018_v54  ;;  %v1039_v17 = vmul.f32 %v1038_v63, %v1033_v62  ;;  %v1154_v27 = vmul.f32 %v1147_v9, %v2731_v20  ;;  %v1209_v54 = vld [vmem:[#allocation8 + $0xf0] sm:$0xff]  ;;  %v1108_v62 = vld [vmem:[#allocation8 + $0x1b8] sm:$0xff] }
 0x354   : > { %v1054_v29 = vmul.f32 %v1053_v4, %v1048_v12  ;;  %v1083_v30 = vmax.f32 %v1082_v5, 0.0  ;;  %v1112_v31 = vadd.f32 %v1111_v6, %v1106_v13  ;;  %v1170_v33 = vmul.f32 %v1164_v16, %v2722_v59  ;;  %v1166_v5 = vld [vmem:[#allocation8 + $0x158] sm:$0xff] }
 0x355   : > { %v1025_v23 = vadd.f32 %v1024_v11, %v1009_v10  ;;  %v1126_v36 = vadd.f32 %v1125_v14, %v1124_v25  ;;  %v1141_v37 = vadd.f32 %v1140_v15, %v1139_v26  ;;  %v1169_v38 = vmul.f32 %v1162_v22, %v2731_v20  ;;  %v1222_v8 = vld [vmem:[#allocation8 + $0x78] sm:$0xff]  ;;  %v1123_v14 = vld [vmem:[#allocation8 + $0x1c0] sm:$0xff]  ;;  %v1196_v22 = vld [vmem:[#allocation8 + $0x168] sm:$0xff] }
 0x356   : > { %v1069_v41 = vmul.f32 %v1068_v18, %v1063_v24  ;;  %v1098_v43 = vmax.f32 %v1097_v19, 0.0  ;;  %v1185_v45 = vmul.f32 %v1179_v28, %v2722_v59  ;;  %v1156_v50 = vadd.f32 %v1155_v21, %v1154_v27  ;;  %v1181_v15 = vld [vmem:[#allocation8 + $0x160] sm:$0xff]  ;;  %v1138_v24 = vld [vmem:[#allocation8 + $0x1c8] sm:$0xff] }
 0x357   : > { %v1040_v35 = vadd.f32 %v1039_v17, %v1025_v23  ;;  %v1127_v49 = vadd.f32 %v1126_v36, %v1121_v32  ;;  %v1184_v52 = vmul.f32 %v1177_v34, %v2731_v20  ;;  %v1113_v55 = vmax.f32 %v1112_v31, 0.0  ;;  %v1211_v32 = vld [vmem:[#allocation8 + $0x170] sm:$0xff] }
 0x358   : > { %v1199_v57 = vmul.f32 %v1192_v39, %v2731_v20  ;;  %v1200_v58 = vmul.f32 %v1194_v40, %v2722_v59  ;;  %v1084_v61 = vmul.f32 %v1083_v30, %v1078_v42  ;;  %v1142_v63 = vadd.f32 %v1141_v37, %v1136_v44  ;;  %v1153_v30 = vld [vmem:[#allocation8 + $0x1d0] sm:$0xff]  ;;  %v1226_v37 = vld [vmem:[#allocation8 + $0x178] sm:$0xff] }
 0x359   : > { %v1055_v47 = vadd.f32 %v1054_v29, %v1040_v35  ;;  %v1171_v2 = vadd.f32 %v1170_v33, %v1169_v38  ;;  %v1099_v4 = vmul.f32 %v1098_v43, %v1093_v48  ;;  %v1214_v6 = vmul.f32 %v1207_v53, %v2731_v20 }
 0x35a   : > { %v1215_v7 = vmul.f32 %v1209_v54, %v2722_v59  ;;  %v1128_v10 = vmax.f32 %v1127_v49, 0.0  ;;  %v1157_v11 = vadd.f32 %v1156_v50, %v1151_v56  ;;  %v1186_v12 = vadd.f32 %v1185_v45, %v1184_v52  ;;  %v1213_v52 = vld [vmem:[#allocation8 + $0x1f0] sm:$0xff]  ;;  %v1228_v56 = vld [vmem:[#allocation8 + $0x1f8] sm:$0xff] }
 0x35b   : > { %v1070_v60 = vadd.f32 %v1069_v41, %v1055_v47  ;;  %v1114_v13 = vmul.f32 %v1113_v55, %v1108_v62  ;;  %v1201_v16 = vadd.f32 %v1200_v58, %v1199_v57  ;;  %v1230_v17 = vmul.f32 %v1224_v3, %v2722_v59  ;;  %v1168_v59 = vld [vmem:[#allocation8 + $0x1d8] sm:$0xff]  ;;  %v1198_v47 = vld [vmem:[#allocation8 + $0x1e8] sm:$0xff]  ;;  %v1236_v62 = vld [vmem:[%s2856_s7] sm:$0xff] }
 0x35c   : > { %v1143_v19 = vmax.f32 %v1142_v63, 0.0  ;;  %v1172_v21 = vadd.f32 %v1171_v2, %v1166_v5  ;;  %v1229_v23 = vmul.f32 %v1222_v8, %v2731_v20  ;;  %v1216_v25 = vadd.f32 %v1215_v7, %v1214_v6  ;;  %v1183_v20 = vld [vmem:[#allocation8 + $0x1e0] sm:$0xff] }
 0x35d   : > { %v1085_v9 = vadd.f32 %v1084_v61, %v1070_v60  ;;  %v1129_v27 = vmul.f32 %v1128_v10, %v1123_v14  ;;  %v1158_v28 = vmax.f32 %v1157_v11, 0.0  ;;  %v1187_v29 = vadd.f32 %v1186_v12, %v1181_v15 }
 0x35e   : > { %v1202_v31 = vadd.f32 %v1201_v16, %v1196_v22  ;;  %v1144_v34 = vmul.f32 %v1143_v19, %v1138_v24  ;;  %v1173_v35 = vmax.f32 %v1172_v21, 0.0  ;;  %v1231_v36 = vadd.f32 %v1230_v17, %v1229_v23 }
 0x35f   : > { %v1100_v18 = vadd.f32 %v1099_v4, %v1085_v9  ;;  %v1159_v39 = vmul.f32 %v1158_v28, %v1153_v30  ;;  %v1188_v40 = vmax.f32 %v1187_v29, 0.0  ;;  %v1217_v41 = vadd.f32 %v1216_v25, %v1211_v32 }
 0x360   : > { %v1174_v43 = vmul.f32 %v1173_v35, %v1168_v59  ;;  %v1203_v44 = vmax.f32 %v1202_v31, 0.0  ;;  %v1232_v45 = vadd.f32 %v1231_v36, %v1226_v37 }
 0x361   : > { %v1115_v26 = vadd.f32 %v1114_v13, %v1100_v18  ;;  %v1189_v49 = vmul.f32 %v1188_v40, %v1183_v20  ;;  %v1218_v50 = vmax.f32 %v1217_v41, 0.0 }
 0x362   : > { %v1204_v54 = vmul.f32 %v1203_v44, %v1198_v47  ;;  %v1233_v55 = vmax.f32 %v1232_v45, 0.0 }
 0x363   : > { %v1130_v33 = vadd.f32 %v1129_v27, %v1115_v26  ;;  %v1219_v58 = vmul.f32 %v1218_v50, %v1213_v52 }
 0x364   : > { %v1234_v61 = vmul.f32 %v1233_v55, %v1228_v56 }
 0x365   : > { %v1145_v38 = vadd.f32 %v1144_v34, %v1130_v33 }
 0x367   : > { %v1160_v42 = vadd.f32 %v1159_v39, %v1145_v38 }
 0x369   : > { %v1175_v48 = vadd.f32 %v1174_v43, %v1160_v42 }
 0x36b   : > { %v1190_v53 = vadd.f32 %v1189_v49, %v1175_v48 }
 0x36d   : > { %v1205_v57 = vadd.f32 %v1204_v54, %v1190_v53 }
 0x36f   : > { %v1220_v60 = vadd.f32 %v1219_v58, %v1205_v57 }
 0x371   : > { %v1235_v63 = vadd.f32 %v1234_v61, %v1220_v60 }
 0x373   : > { %v1237_v2 = vadd.f32 %v1236_v62, %v1235_v63 }
 0x375   : > { %v1426_v3 = vsel %vm1425_vm10, %v1237_v2, -inf  ;;  %v1327_v4 = vsel %vm1326_vm11, %v1237_v2, -inf  ;;  %v1524_v5 = vsel %vm1523_vm12, %v1237_v2, -inf  ;;  %v1238_v18 = vsel %vm991_vm7, %v1237_v2, -inf }
 0x376   : > { %1427 = vmax.xlane.f32.xlu0 %v1426_v3  ;;  %1328 = vmax.xlane.f32.xlu1 %v1327_v4 }
 0x37a   : > { %1525 = vmax.xlane.f32.xlu0 %v1524_v5 }
 0x403   : > { %v1428_v6 = vpop.xlane.xlu0 %1427  ;;  %v1329_v7 = vpop.xlane.xlu1 %1328 }
 0x404   : > { %v1429_v8 = vsub.f32 %v1237_v2, %v1428_v6  ;;  %v1330_v9 = vsub.f32 %v1237_v2, %v1329_v7 }
 0x406   : > { %v1430_v10 = vmul.f32 1.442695, %v1429_v8  ;;  %v1331_v11 = vmul.f32 1.442695, %v1330_v9 }
 0x407   : > { %v1526_v12 = vpop.xlane.xlu0 %1525 }
 0x408   : > { %2125 = vpow2.f32 %v1430_v10  ;;  %v1527_v13 = vsub.f32 %v1237_v2, %v1526_v12 }
 0x409   : > { %2127 = vpow2.f32 %v1331_v11 }
 0x40a   : > { %v1528_v14 = vmul.f32 1.442695, %v1527_v13 }
 0x40c   : > { %2129 = vpow2.f32 %v1528_v14 }
 0x412   : > { %v2126_v15 = vpop.eup %2125 }
 0x413   : > { %v2128_v16 = vpop.eup %2127  ;;  %1433 = vrot.lane.b32.xlu0 %v2126_v15, %s2346_s16 }
 0x414   : > { %1334 = vrot.lane.b32.xlu1 %v2128_v16, %s2353_s19 }
 0x416   : > { %v2130_v17 = vpop.eup %2129 }
 0x418   : > { %1531 = vrot.lane.b32.xlu1 %v2130_v17, %s2354_s11 }
 0x43c   : > { %1239 = vmax.xlane.f32.xlu1 %v1238_v18 }
 0x485   : > { %v1434_v22 = vpop.permute.xlu0 %1433 }
 0x486   : > { %v1335_v19 = vpop.permute.xlu1 %1334  ;;  %v1436_v24 = vsel %vm991_vm7, %v1434_v22, 0.0 }
 0x487   : > { %v1337_v21 = vsel %vm991_vm7, %v1335_v19, 0.0 }
 0x488   : > { %1338 = vadd.xlane.f32.xlu0 %v1337_v21 }
 0x48a   : > { %v1532_v23 = vpop.permute.xlu1 %1531 }
 0x48b   : > { %v1534_v25 = vsel %vm991_vm7, %v1532_v23, 0.0 }
 0x48c   : > { %1437 = vadd.xlane.f32.xlu0 %v1436_v24  ;;  %1535 = vadd.xlane.f32.xlu1 %v1534_v25 }
 0x49d   : > { %2111 = vrot.lane.b32.xlu1 %v2717_v51, %s2347_s23  ;;  %s2803_s23 = scalar_lea.hbm %s2857_s8, %s1819_s24 }
 0x4a1   : > { %2121 = vrot.lane.b32.xlu1 %v2717_v51, %s2346_s16 }
 0x4c9   : > { %v1240_v26 = vpop.xlane.xlu1 %1239 }
 0x4ca   : > { %v1241_v27 = vsub.f32 %v1237_v2, %v1240_v26 }
 0x4cc   : > { %v1242_v28 = vmul.f32 1.442695, %v1241_v27 }
 0x4ce   : > { %2131 = vpow2.f32 %v1242_v28 }
 0x4d8   : > { %v2132_v29 = vpop.eup %2131 }
 0x4d9   : > { %v1244_v30 = vsel %vm991_vm7, %v2132_v29, 0.0 }
 0x4da   : > { %1245 = vadd.xlane.f32.xlu0 %v1244_v30 }
 0x4f0   : > { %2116 = vrot.lane.b32.xlu0 %v2717_v51, %s2348_s18  ;;  %s2357_s18 = smov [#allocation10]  }
 0x4f1   : > { %s2261_s26 = sshll.u32 %s2357_s18, 4  ;;  %s2262_s26 = int_to_ptr.vmem [resolvable:$false] %s2261_s26 }
 0x4f2   : > { %p2264_p5 = scmp.lt.s32.totalorder %s2805_s20, %s2262_s26 }
 0x515   : > { %v1339_v31 = vpop.xlane.xlu0 %1338 }
 0x516   : > { %2133 = vrcp.f32 %v1339_v31 }
 0x519   : > { %v1438_v32 = vpop.xlane.xlu0 %1437  ;;  %v1536_v33 = vpop.xlane.xlu1 %1535 }
 0x51a   : > { %2135 = vrcp.f32 %v1438_v32 }
 0x51b   : > { %2137 = vrcp.f32 %v1536_v33 }
 0x51d   : > { %v2112_v20 = vpop.permute.xlu1 %2111 }
 0x51e   : > { %v2114_v43 = vunpack.i.h.bf16 %v2112_v20  ;;  %v2113_v44 = vunpack.i.l.bf16 %v2112_v20 }
 0x520   : > { %v2134_v34 = vpop.eup %2133  ;;  %v1996_v48 = vpack.c.bf16 %v2114_v43, %v2113_v44 }
 0x521   : > { %v1341_v35 = vmul.f32 %v2134_v34, %v2128_v16  ;;  %v2122_v49 = vpop.permute.xlu1 %2121 }
 0x522   : > { %v2124_v50 = vunpack.i.h.bf16 %v2122_v49  ;;  %v2123_v52 = vunpack.i.l.bf16 %v2122_v49 }
 0x523   : > { %1343 = vrot.lane.b32.xlu1 %v1341_v35, %s2353_s19 }
 0x524   : > { %v2136_v36 = vpop.eup %2135  ;;  %v2004_v53 = vpack.c.bf16 %v2124_v50, %v2123_v52 }
 0x525   : > { %v2138_v59 = vpop.eup %2137  ;;  %v1440_v37 = vmul.f32 %v2136_v36, %v2126_v15 }
 0x526   : > { %v1538_v38 = vmul.f32 %v2138_v59, %v2130_v17 }
 0x527   : > { %1442 = vrot.lane.b32.xlu0 %v1440_v37, %s2346_s16 }
 0x528   : > { %1540 = vrot.lane.b32.xlu1 %v1538_v38, %s2354_s11 }
 0x567   : > { %v1246_v39 = vpop.xlane.xlu0 %1245 }
 0x568   : > { %2139 = vrcp.f32 %v1246_v39 }
 0x56b   : > { %v2117_v51 = vpop.permute.xlu0 %2116 }
 0x56c   : > { %v2119_v40 = vunpack.i.h.bf16 %v2117_v51  ;;  %v2118_v41 = vunpack.i.l.bf16 %v2117_v51 }
 0x56e   : > { %v2000_v42 = vpack.c.bf16 %v2119_v40, %v2118_v41 }
 0x570   : > { %2002 = vmatpush3.bf16.msk.msra.mxu0 %vm2703_vm6, %v2000_v42 }
 0x572   : > { %v2140_v45 = vpop.eup %2139 }
 0x573   : > { %v1248_v47 = vmul.f32 %v2140_v45, %v2132_v29 }
 0x575   : > { %1930 = vmatmul.mubr.msk.f32.vlgmr.msra.gmra.mrb[6].mxu1 %vm991_vm7, %v1248_v47 }
 0x576   : > { %1998 = vmatpush3.bf16.msk.msra.mxu1 %vm2703_vm6, %v1996_v48  ;;  %1936 = vmatprep.mubr.msk.f32.mxu1 %vm2344_vm0, %v2345_v1 }
 0x577   : > { %2003 = vmatprep.subr.bf16.mxu1 %v2343_v0 }
 0x595   : > { %v1344_v54 = vpop.permute.xlu1 %1343 }
 0x596   : > { %1937 = vmatmul.mubr.msk.f32.vlgmr.msra.gmra.mrb[8].mxu1 %vm991_vm7, %v1344_v54 }
 0x597   : > { %2006 = vmatpush3.bf16.msk.msra.mxu1 %vm2703_vm6, %v2004_v53  ;;  %1950 = vmatprep.mubr.msk.f32.mxu1 %vm2344_vm0, %v2345_v1 }
 0x599   : > { %v1443_v55 = vpop.permute.xlu0 %1442 }
 0x59a   : > { %v1541_v56 = vpop.permute.xlu1 %1540  ;;  %1944 = vmatmul.mubr.msk.f32.vlgmr.msra.gmra.mrb[8].mxu0 %vm991_vm7, %v1443_v55 }
 0x59b   : > { %1951 = vmatmul.mubr.msk.f32.vlgmr.msra.gmra.mrb[10].mxu1 %vm991_vm7, %v1541_v56 }
 0x648   : > { %v1322_v0 = vpop.f32.mrb[6].mxu1 }
 0x649   : > { %v1931_v57 = vpop.f32.mrb[7].mxu1 }
 0x669   : > { %v1421_v58 = vpop.f32.mrb[8].mxu1 }
 0x66a   : > { %1622 = vrot.lane.b32.xlu0 %v1421_v58, %s2355_s29  ;;  %v1938_v60 = vpop.f32.mrb[9].mxu1 }
 0x66d   : > { %v1519_v61 = vpop.f32.mrb[8].mxu0 }
 0x66e   : > { %v1617_v46 = vpop.f32.mrb[10].mxu1  ;;  %1626 = vrot.lane.b32.xlu1 %v1519_v61, %s2356_s21  ;;  %v1945_v62 = vpop.f32.mrb[9].mxu0 }
 0x66f   : > { %1630 = vrot.lane.b32.xlu0 %v1617_v46, %s2351_s17  ;;  %v1952_v1 = vpop.f32.mrb[11].mxu1  ;;  %s2263_s17 = scalar_lea.vmem %s2262_s26, 256 }
 0x670   : > { %p2265_p3 = scmp.lt.s32.totalorder %s2263_s17, %s2257_s6 }
 0x672   : > { %p2266_p7 = por %p2265_p3, %p2264_p5 }
 0x674   : > { %p2267_p1 = pnand %p2266_p7, %p2260_p4 }
 0x6dc   : > { %v1623_v63 = vpop.permute.xlu0 %1622 }
 0x6dd   : > { %v1633_v2 = vsel %vm653_vm2, %v1322_v0, %v1623_v63 }
 0x6e0   : > { %v1627_v3 = vpop.permute.xlu1 %1626 }
 0x6e1   : > { %v1631_v4 = vpop.permute.xlu0 %1630  ;;  %v1635_v5 = vsel %vm1634_vm13, %v1633_v2, %v1627_v3 }
 0x6e2   : > { %v1636_v6 = vsel %vm993_vm8, %v1635_v5, %v1631_v4 }
 0x6e3   : > { %1637 = vst.msk [vmem:[%s401_s10] sm:$0xff] %vm415_vm1, %v1636_v6 }
 0x6e4   : > { %2270 = shalt.err (!%p2267_p1)
}
 0x6e5   : > { %s2271_s25 = scalar_lea.hbm %s2803_s23, 128  ;;  %s2275_s13 = scalar_lea.hbm %s2857_s8, 256 }
 0x6e6   : > { %p2272_p8 = scmp.ne.s32.totalorder %s2803_s23, %s2271_s25  ;;  %p2276_p9 = scmp.lt.u32.totalorder %s2803_s23, %s2857_s8 }
 0x6e7   : > { %p2277_p12 = scmp.lt.u32.totalorder %s2275_s13, %s2271_s25  ;;  %p2279_p13 = scmp.lt.u32.totalorder %s2271_s25, %s2803_s23 }
 0x6e8   : > { %p2273_p11 = pnand %p2272_p8, %p2889_p6 }
 0x6e9   : > { %p2278_p2 = por %p2277_p12, %p2276_p9 }
 0x6ea   : > { %p2274_p0 = pneg %p2273_p11 }
 0x6eb   : > { %p2280_p10 = por %p2279_p13, %p2278_p2 }
 0x6ed   : > { %p2281_p4 = pnand %p2280_p10, %p2274_p0 }
 0x6ef   : > { %2284 = shalt.err (!%p2281_p4)
}
 0x6f0   : > { %2019 = dma.vmem_to_hbm [thread:$0]  (%p2889_p6), %s2805_s20, 128, %s2803_s23, %s1639_s9  }
 0x6f1 PF: > { %s1664_s29 = sand.u32 1, %s2323_s27   ;;  %p2890_p5 = scmp.ne.s32.totalorder %s2869_s12, 0 }
 0x6f2   : > { %p2891_p3 = scmp.ge.s32.totalorder %s2335_s30, 2  ;;  %s1665_s21 = scalar_lea.sflag [#allocation4], %s1664_s29 }
 0x6f4   : > { %p2036_p7 = pnand %p2891_p3, %p2890_p5 }
 0x6f6   : > { %2318 = dma.done.wait (!%p2036_p7), %s1665_s21, 128  }
 0x6f7   : > { %2320 = vsyncadd (!%p2036_p7), %s1665_s21, 4294967168  ;;  %s2892_s30 = sld [smem:[#allocation17_spill]]  ;;  %s2893_s24 = sld [smem:[#allocation16_spill]] }
 0x6f8   : > { %s2894_s29 = sld [smem:[#allocation18_spill]]  ;;  %s2895_s27 = smov %s2327_s28 }
 0x6fd   : > { %p25_p1 = scmp.ge.s32.totalorder %s2892_s30, 4   ;;  %s2896_s28 = smov %s2893_s24 }
 0x6ff   :  { %27 = sbr.rel (!%p25_p1) target bundleno = 11 (0xb), region = 184 }
 0x706   :  { %1670 = vsyncpa [#allocation3], 1 }
 0x707   :  { %1672 = vsyncpa [#allocation3 + $0x1], 1 }
 0x708   :  { %1673 = vsyncpa [#allocation6], 1 }
 0x709   :  { %1675 = vsyncpa [#allocation6 + $0x1], 1 }
 0x70a   :  { %1676 = vsyncpa [#allocation9], 1 }
 0x70b   :  { %1677 = vsyncpa [#allocation4], 1 }
 0x70c   :  { %1679 = vsyncpa [#allocation4 + $0x1], 1 }

</bundles_post_ra>
